<compile_context>
chip_gen: v7x
topology: tpu7x:2x2x1
jax: 0.10.0
libtpu: 0.0.40
codegen_flags: <defaults>
</compile_context>

<pallas_src>
import jax
import jax.numpy as jnp
from jax.experimental import pallas as pl
from jax.experimental.pallas import tpu as pltpu

TOTAL_BONES = 23
NB = TOTAL_BONES - 1          # 22 refined bones
EMBED = 69                    # embedding_size
WIDTH = 256                   # mlp_width
PAD = 128                     # per-axis column padding for the dstR/dstT tails

# Packed-bias column offsets (all multiples of 128)
_B0, _B1, _B2, _BH1, _BR2, _BT2, _BEND = 0, 256, 512, 768, 1280, 1664, 1792


def _refiner_kernel(x_ref, w0_ref, wmid_ref, wtail_ref, bias_ref, r_ref, t_ref):
    f32 = jnp.float32
    bf16 = jnp.bfloat16

    # ---- trunk MLP (bf16 operands, f32 MXU accumulation) ----
    x = x_ref[...].astype(bf16)
    h = jnp.maximum(jnp.dot(x, w0_ref[...], preferred_element_type=f32)
                    + bias_ref[:, _B0:_B1], 0.0)
    h = jnp.maximum(jnp.dot(h.astype(bf16), wmid_ref[:, 0:256], preferred_element_type=f32)
                    + bias_ref[:, _B1:_B2], 0.0)
    h = jnp.maximum(jnp.dot(h.astype(bf16), wmid_ref[:, 256:512], preferred_element_type=f32)
                    + bias_ref[:, _B2:_BH1], 0.0)

    # ---- fused head layer-1: one (256, 512) matmul, split at 128-aligned column 256 ----
    h1 = jnp.maximum(jnp.dot(h.astype(bf16), wmid_ref[:, 512:1024], preferred_element_type=f32)
                     + bias_ref[:, _BH1:_BR2], 0.0)
    hr = h1[:, :WIDTH].astype(bf16)       # dstR branch hidden
    ht = h1[:, WIDTH:].astype(bf16)       # dstT branch hidden

    # ---- dstR last layer: columns pre-permuted and padded to [x(128) | y(128) | z(128)] ----
    r3 = (jnp.dot(hr, wtail_ref[:, 0:384], preferred_element_type=f32)
          + bias_ref[:, _BR2:_BT2])
    rx = r3[:, 0:128]          # only the first NB lanes are real; padding is exactly 0
    ry = r3[:, 128:256]
    rz = r3[:, 256:384]

    # ---- Rodrigues formula (matches RodriguesModule, eps inside sqrt) ----
    s2 = 1e-5 + rx * rx + ry * ry + rz * rz
    inv_t = jax.lax.rsqrt(s2)          # 1 / theta
    theta = s2 * inv_t                 # sqrt(s2)
    nx = rx * inv_t
    ny = ry * inv_t
    nz = rz * inv_t
    c = jnp.cos(theta)
    s = jnp.sin(theta)
    one_c = 1.0 - c

    # nine (B, NB) element planes -> one (9, B, NB) buffer (single writeback DMA)
    r_ref[0, :, :] = (nx * nx + (1.0 - nx * nx) * c)[:, :NB]
    r_ref[1, :, :] = (nx * ny * one_c - nz * s)[:, :NB]
    r_ref[2, :, :] = (nx * nz * one_c + ny * s)[:, :NB]
    r_ref[3, :, :] = (nx * ny * one_c + nz * s)[:, :NB]
    r_ref[4, :, :] = (ny * ny + (1.0 - ny * ny) * c)[:, :NB]
    r_ref[5, :, :] = (ny * nz * one_c - nx * s)[:, :NB]
    r_ref[6, :, :] = (nx * nz * one_c - ny * s)[:, :NB]
    r_ref[7, :, :] = (ny * nz * one_c + nx * s)[:, :NB]
    r_ref[8, :, :] = (nz * nz + (1.0 - nz * nz) * c)[:, :NB]

    # ---- dstT last layer (padded to 128 output columns; only first 66 are real) ----
    t_full = (jnp.dot(ht, wtail_ref[:, 384:512], preferred_element_type=f32)
              + bias_ref[:, _BT2:_BEND])
    t_ref[...] = t_full[:, :3 * NB]


def _pad_cols(w, n):
    return jnp.pad(w, ((0, 0), (0, n - w.shape[1])))


def _pad_vec(v, n):
    return jnp.pad(v, (0, n - v.shape[0]))


def prepare_params(params):
    """One-time parameter packing (do NOT call per forward pass).

    Produces 4 slabs:
      w0      (69, 256)   bf16
      wmid    (256, 1024) bf16   = [w1 | w2 | wr1 | wt1]
      wtail   (256, 512)  bf16   = [wr2_x(pad128) | wr2_y(pad128) | wr2_z(pad128) | wt2(pad128)]
      biases  (1, 1792)   f32    = [b0 | b1 | b2 | br1 | bt1 | br2(perm,pad) | bt2(pad)]
    All column offsets are multiples of 128 so in-kernel slices are free.
    """
    (w0, b0, w1, b1, w2, b2, wr1, br1, wr2, br2, wt1, bt1, wt2, bt2) = params
    bf16 = jnp.bfloat16
    f32 = jnp.float32

    wmid = jnp.concatenate([w1, w2, wr1, wt1], axis=1)                    # (256, 1024)

    wr2x = _pad_cols(wr2[:, 0::3], PAD)                                   # (256, 128) each
    wr2y = _pad_cols(wr2[:, 1::3], PAD)
    wr2z = _pad_cols(wr2[:, 2::3], PAD)
    wt2p = _pad_cols(wt2, PAD)                                            # (256, 128)
    wtail = jnp.concatenate([wr2x, wr2y, wr2z, wt2p], axis=1)             # (256, 512)

    br2x = _pad_vec(br2[0::3], PAD)
    br2y = _pad_vec(br2[1::3], PAD)
    br2z = _pad_vec(br2[2::3], PAD)
    bt2p = _pad_vec(bt2, PAD)
    biases = jnp.concatenate([b0, b1, b2, br1, bt1, br2x, br2y, br2z, bt2p],
                             axis=0).reshape(1, _BEND).astype(f32)        # (1, 1792)

    return (w0.astype(bf16), wmid.astype(bf16), wtail.astype(bf16), biases)


def body_pose_refiner(pose_input, prepared):
    """pose_input: (B, 69) f32; prepared: output of prepare_params.
    Returns {'Rs': (B, 22, 3, 3), 'Ts': (B, 22, 3)}."""
    B = pose_input.shape[0]
    w0, wmid, wtail, biases = prepared
    vmem = pl.BlockSpec(memory_space=pltpu.MemorySpace.VMEM)

    out_shape = (jax.ShapeDtypeStruct((9, B, NB), jnp.float32),   # rotation element planes
                 jax.ShapeDtypeStruct((B, 3 * NB), jnp.float32))  # translations (interleaved)

    # Advisory cost hint so XLA schedules surrounding HLO around this tiny call.
    flops = 2 * B * (EMBED * WIDTH + 2 * WIDTH * WIDTH + WIDTH * 2 * WIDTH
                     + WIDTH * 3 * PAD + WIDTH * PAD)
    bytes_accessed = (w0.size * 2 + wmid.size * 2 + wtail.size * 2 + biases.size * 4
                      + pose_input.size * 4 + (9 * B * NB + B * 3 * NB) * 4)
    cost = pl.CostEstimate(flops=flops, transcendentals=3 * B * PAD,
                           bytes_accessed=bytes_accessed)

    r_planes, ts_flat = pl.pallas_call(
        _refiner_kernel,
        out_shape=out_shape,
        in_specs=[vmem] * 5,
        out_specs=(vmem, vmem),
        cost_estimate=cost,
    )(pose_input, w0, wmid, wtail, biases)

    # r_planes[e, b, k] = row-major 3x3 element e of bone k
    Rs = jnp.transpose(r_planes, (1, 2, 0)).reshape(B, NB, 3, 3)
    Ts = ts_flat.reshape(B, NB, 3)
    return {'Rs': Rs, 'Ts': Ts}


def init_params(key):
    """Deterministic synthetic init (xavier-uniform-ish; last head layers U(-1e-5,1e-5), zero bias)."""
    def linear(k, fan_in, fan_out, limit=None):
        kw, kb = jax.random.split(k)
        if limit is None:
            limit = (6.0 / (fan_in + fan_out)) ** 0.5
        w = jax.random.uniform(kw, (fan_in, fan_out), jnp.float32, -limit, limit)
        b = jax.random.uniform(kb, (fan_out,), jnp.float32, -limit, limit)
        return w, b

    ks = jax.random.split(key, 7)
    w0, b0 = linear(ks[0], EMBED, WIDTH)
    w1, b1 = linear(ks[1], WIDTH, WIDTH)
    w2, b2 = linear(ks[2], WIDTH, WIDTH)
    wr1, br1 = linear(ks[3], WIDTH, WIDTH)
    wr2, _ = linear(ks[4], WIDTH, 3 * NB, limit=1e-5)
    br2 = jnp.zeros((3 * NB,), jnp.float32)
    wt1, bt1 = linear(ks[5], WIDTH, WIDTH)
    wt2, _ = linear(ks[6], WIDTH, 3 * NB, limit=1e-5)
    bt2 = jnp.zeros((3 * NB,), jnp.float32)
    return (w0, b0, w1, b1, w2, b2, wr1, br1, wr2, br2, wt1, bt1, wt2, bt2)


def reference(pose_input, params):
    """Pure-JAX f32 reference of the PyTorch forward, for validation."""
    (w0, b0, w1, b1, w2, b2, wr1, br1, wr2, br2, wt1, bt1, wt2, bt2) = params
    relu = jax.nn.relu
    h = relu(pose_input @ w0 + b0)
    h = relu(h @ w1 + b1)
    h = relu(h @ w2 + b2)
    hr = relu(h @ wr1 + br1)
    rvec = (hr @ wr2 + br2).reshape(-1, 3)
    theta = jnp.sqrt(1e-5 + jnp.sum(rvec ** 2, axis=1))
    r = rvec / theta[:, None]
    c, s = jnp.cos(theta), jnp.sin(theta)
    x, y, z = r[:, 0], r[:, 1], r[:, 2]
    R = jnp.stack([
        x * x + (1 - x * x) * c, x * y * (1 - c) - z * s, x * z * (1 - c) + y * s,
        x * y * (1 - c) + z * s, y * y + (1 - y * y) * c, y * z * (1 - c) - x * s,
        x * z * (1 - c) - y * s, y * z * (1 - c) + x * s, z * z + (1 - z * z) * c,
    ], axis=1).reshape(-1, NB, 3, 3)
    ht = relu(h @ wt1 + bt1)
    Ts = (ht @ wt2 + bt2).reshape(-1, NB, 3)
    return {'Rs': R, 'Ts': Ts}


if __name__ == "__main__":
    key = jax.random.PRNGKey(0)
    k_param, k_in = jax.random.split(key)
    params = init_params(k_param)
    prepared = jax.block_until_ready(prepare_params(params))   # one-time prep, off the hot path

    B = 8  # batch of pose embeddings, each (69,) = 23 bones * 3 axis-angle comps
    pose_input = 0.1 * jax.random.normal(k_in, (B, EMBED), jnp.float32)

    refiner = jax.jit(body_pose_refiner)
    out = jax.block_until_ready(refiner(pose_input, prepared))

    ref = reference(pose_input, params)
    assert out['Rs'].shape == (B, NB, 3, 3)
    assert out['Ts'].shape == (B, NB, 3)
    assert jnp.all(jnp.isfinite(out['Rs'])) and jnp.all(jnp.isfinite(out['Ts']))
    assert jnp.max(jnp.abs(out['Rs'] - ref['Rs'])) < 1e-3
    assert jnp.max(jnp.abs(out['Ts'] - ref['Ts'])) < 1e-3

    print("KERNEL_OK")
</pallas_src>

<mosaic_0001>
module attributes {stable_mosaic.version = 11 : i64} {
  func.func @_refiner_kernel(%arg0: memref<8x69xf32, #tpu.memory_space<vmem>>, %arg1: memref<69x256xbf16, #tpu.memory_space<vmem>>, %arg2: memref<256x1024xbf16, #tpu.memory_space<vmem>>, %arg3: memref<256x512xbf16, #tpu.memory_space<vmem>>, %arg4: memref<1x1792xf32, #tpu.memory_space<vmem>>, %arg5: memref<9x8x22xf32, #tpu.memory_space<vmem>>, %arg6: memref<8x66xf32, #tpu.memory_space<vmem>>) attributes {dimension_semantics = [], scalar_prefetch = 0 : i64, scratch_operands = 0 : i64, tpu.core_type = #tpu.core_type<tc>} {
    %c0 = arith.constant 0 : index
    %c0_0 = arith.constant 0 : index
    %0 = vector.load %arg0[%c0, %c0_0] : memref<8x69xf32, #tpu.memory_space<vmem>>, vector<8x69xf32>
    %1 = arith.truncf %0 : vector<8x69xf32> to vector<8x69xbf16>
    %c0_1 = arith.constant 0 : index
    %c0_2 = arith.constant 0 : index
    %2 = vector.load %arg1[%c0_1, %c0_2] : memref<69x256xbf16, #tpu.memory_space<vmem>>, vector<69x256xbf16>
    %cst = arith.constant dense<0.000000e+00> : vector<8x256xf32>
    %3 = tpu.matmul %1, %2, %cst {dimension_numbers = #tpu.dot_dimension_numbers<[1], [0], [0], [1], [0, 0, 1, 1], [], []>} : vector<8x69xbf16>, vector<69x256xbf16>, vector<8x256xf32> -> vector<8x256xf32>
    %c0_3 = arith.constant 0 : index
    %c0_4 = arith.constant 0 : index
    %4 = vector.load %arg4[%c0_3, %c0_4] : memref<1x1792xf32, #tpu.memory_space<vmem>>, vector<1x256xf32>
    %5 = vector.broadcast %4 : vector<1x256xf32> to vector<8x256xf32>
    %6 = arith.addf %3, %5 : vector<8x256xf32>
    %cst_5 = arith.constant 0.000000e+00 : f32
    %7 = vector.broadcast %cst_5 : f32 to vector<8x256xf32>
    %8 = arith.maximumf %6, %7 : vector<8x256xf32>
    %9 = arith.truncf %8 : vector<8x256xf32> to vector<8x256xbf16>
    %c0_6 = arith.constant 0 : index
    %c0_7 = arith.constant 0 : index
    %10 = vector.load %arg2[%c0_6, %c0_7] : memref<256x1024xbf16, #tpu.memory_space<vmem>>, vector<256x256xbf16>
    %cst_8 = arith.constant dense<0.000000e+00> : vector<8x256xf32>
    %11 = tpu.matmul %9, %10, %cst_8 {dimension_numbers = #tpu.dot_dimension_numbers<[1], [0], [0], [1], [0, 0, 1, 1], [], []>} : vector<8x256xbf16>, vector<256x256xbf16>, vector<8x256xf32> -> vector<8x256xf32>
    %c0_9 = arith.constant 0 : index
    %c256 = arith.constant 256 : index
    %12 = vector.load %arg4[%c0_9, %c256] : memref<1x1792xf32, #tpu.memory_space<vmem>>, vector<1x256xf32>
    %13 = vector.broadcast %12 : vector<1x256xf32> to vector<8x256xf32>
    %14 = arith.addf %11, %13 : vector<8x256xf32>
    %cst_10 = arith.constant 0.000000e+00 : f32
    %15 = vector.broadcast %cst_10 : f32 to vector<8x256xf32>
    %16 = arith.maximumf %14, %15 : vector<8x256xf32>
    %17 = arith.truncf %16 : vector<8x256xf32> to vector<8x256xbf16>
    %c0_11 = arith.constant 0 : index
    %c256_12 = arith.constant 256 : index
    %18 = vector.load %arg2[%c0_11, %c256_12] : memref<256x1024xbf16, #tpu.memory_space<vmem>>, vector<256x256xbf16>
    %cst_13 = arith.constant dense<0.000000e+00> : vector<8x256xf32>
    %19 = tpu.matmul %17, %18, %cst_13 {dimension_numbers = #tpu.dot_dimension_numbers<[1], [0], [0], [1], [0, 0, 1, 1], [], []>} : vector<8x256xbf16>, vector<256x256xbf16>, vector<8x256xf32> -> vector<8x256xf32>
    %c0_14 = arith.constant 0 : index
    %c512 = arith.constant 512 : index
    %20 = vector.load %arg4[%c0_14, %c512] : memref<1x1792xf32, #tpu.memory_space<vmem>>, vector<1x256xf32>
    %21 = vector.broadcast %20 : vector<1x256xf32> to vector<8x256xf32>
    %22 = arith.addf %19, %21 : vector<8x256xf32>
    %cst_15 = arith.constant 0.000000e+00 : f32
    %23 = vector.broadcast %cst_15 : f32 to vector<8x256xf32>
    %24 = arith.maximumf %22, %23 : vector<8x256xf32>
    %25 = arith.truncf %24 : vector<8x256xf32> to vector<8x256xbf16>
    %c0_16 = arith.constant 0 : index
    %c512_17 = arith.constant 512 : index
    %26 = vector.load %arg2[%c0_16, %c512_17] : memref<256x1024xbf16, #tpu.memory_space<vmem>>, vector<256x512xbf16>
    %cst_18 = arith.constant dense<0.000000e+00> : vector<8x512xf32>
    %27 = tpu.matmul %25, %26, %cst_18 {dimension_numbers = #tpu.dot_dimension_numbers<[1], [0], [0], [1], [0, 0, 1, 1], [], []>} : vector<8x256xbf16>, vector<256x512xbf16>, vector<8x512xf32> -> vector<8x512xf32>
    %c0_19 = arith.constant 0 : index
    %c768 = arith.constant 768 : index
    %28 = vector.load %arg4[%c0_19, %c768] : memref<1x1792xf32, #tpu.memory_space<vmem>>, vector<1x512xf32>
    %29 = vector.broadcast %28 : vector<1x512xf32> to vector<8x512xf32>
    %30 = arith.addf %27, %29 : vector<8x512xf32>
    %cst_20 = arith.constant 0.000000e+00 : f32
    %31 = vector.broadcast %cst_20 : f32 to vector<8x512xf32>
    %32 = arith.maximumf %30, %31 : vector<8x512xf32>
    %33 = vector.extract_strided_slice %32 {offsets = [0, 0], sizes = [8, 256], strides = [1, 1]} : vector<8x512xf32> to vector<8x256xf32>
    %34 = arith.truncf %33 : vector<8x256xf32> to vector<8x256xbf16>
    %35 = vector.extract_strided_slice %32 {offsets = [0, 256], sizes = [8, 256], strides = [1, 1]} : vector<8x512xf32> to vector<8x256xf32>
    %36 = arith.truncf %35 : vector<8x256xf32> to vector<8x256xbf16>
    %c0_21 = arith.constant 0 : index
    %c0_22 = arith.constant 0 : index
    %37 = vector.load %arg3[%c0_21, %c0_22] : memref<256x512xbf16, #tpu.memory_space<vmem>>, vector<256x384xbf16>
    %cst_23 = arith.constant dense<0.000000e+00> : vector<8x384xf32>
    %38 = tpu.matmul %34, %37, %cst_23 {dimension_numbers = #tpu.dot_dimension_numbers<[1], [0], [0], [1], [0, 0, 1, 1], [], []>} : vector<8x256xbf16>, vector<256x384xbf16>, vector<8x384xf32> -> vector<8x384xf32>
    %c0_24 = arith.constant 0 : index
    %c1280 = arith.constant 1280 : index
    %39 = vector.load %arg4[%c0_24, %c1280] : memref<1x1792xf32, #tpu.memory_space<vmem>>, vector<1x384xf32>
    %40 = vector.broadcast %39 : vector<1x384xf32> to vector<8x384xf32>
    %41 = arith.addf %38, %40 : vector<8x384xf32>
    %42 = vector.extract_strided_slice %41 {offsets = [0, 0], sizes = [8, 128], strides = [1, 1]} : vector<8x384xf32> to vector<8x128xf32>
    %43 = vector.extract_strided_slice %41 {offsets = [0, 128], sizes = [8, 128], strides = [1, 1]} : vector<8x384xf32> to vector<8x128xf32>
    %44 = vector.extract_strided_slice %41 {offsets = [0, 256], sizes = [8, 128], strides = [1, 1]} : vector<8x384xf32> to vector<8x128xf32>
    %45 = arith.mulf %42, %42 : vector<8x128xf32>
    %cst_25 = arith.constant 9.99999974E-6 : f32
    %46 = vector.broadcast %cst_25 : f32 to vector<8x128xf32>
    %47 = arith.addf %46, %45 : vector<8x128xf32>
    %48 = arith.mulf %43, %43 : vector<8x128xf32>
    %49 = arith.addf %47, %48 : vector<8x128xf32>
    %50 = arith.mulf %44, %44 : vector<8x128xf32>
    %51 = arith.addf %49, %50 : vector<8x128xf32>
    %52 = math.rsqrt %51 : vector<8x128xf32>
    %53 = arith.mulf %51, %52 : vector<8x128xf32>
    %54 = arith.mulf %42, %52 : vector<8x128xf32>
    %55 = arith.mulf %43, %52 : vector<8x128xf32>
    %56 = arith.mulf %44, %52 : vector<8x128xf32>
    %57 = math.cos %53 : vector<8x128xf32>
    %58 = math.sin %53 : vector<8x128xf32>
    %cst_26 = arith.constant 1.000000e+00 : f32
    %59 = vector.broadcast %cst_26 : f32 to vector<8x128xf32>
    %60 = arith.subf %59, %57 : vector<8x128xf32>
    %61 = arith.mulf %54, %54 : vector<8x128xf32>
    %62 = arith.mulf %54, %54 : vector<8x128xf32>
    %cst_27 = arith.constant 1.000000e+00 : f32
    %63 = vector.broadcast %cst_27 : f32 to vector<8x128xf32>
    %64 = arith.subf %63, %62 : vector<8x128xf32>
    %65 = arith.mulf %64, %57 : vector<8x128xf32>
    %66 = arith.addf %61, %65 : vector<8x128xf32>
    %67 = vector.extract_strided_slice %66 {offsets = [0, 0], sizes = [8, 22], strides = [1, 1]} : vector<8x128xf32> to vector<8x22xf32>
    %c0_28 = arith.constant 0 : index
    %c0_29 = arith.constant 0 : index
    %c0_30 = arith.constant 0 : index
    %68 = vector.load %arg5[%c0_28, %c0_29, %c0_30] : memref<9x8x22xf32, #tpu.memory_space<vmem>>, vector<1x8x22xf32>
    %69 = vector.shape_cast %68 : vector<1x8x22xf32> to vector<8x22xf32>
    %70 = vector.shape_cast %67 : vector<8x22xf32> to vector<1x8x22xf32>
    tpu.vector_store %arg5[%c0_28, %c0_29, %c0_30], %70 {strides = array<i32>} : memref<9x8x22xf32, #tpu.memory_space<vmem>>, vector<1x8x22xf32>,
    %71 = arith.mulf %54, %55 : vector<8x128xf32>
    %72 = arith.mulf %71, %60 : vector<8x128xf32>
    %73 = arith.mulf %56, %58 : vector<8x128xf32>
    %74 = arith.subf %72, %73 : vector<8x128xf32>
    %75 = vector.extract_strided_slice %74 {offsets = [0, 0], sizes = [8, 22], strides = [1, 1]} : vector<8x128xf32> to vector<8x22xf32>
    %c1 = arith.constant 1 : index
    %c0_31 = arith.constant 0 : index
    %c0_32 = arith.constant 0 : index
    %76 = vector.load %arg5[%c1, %c0_31, %c0_32] : memref<9x8x22xf32, #tpu.memory_space<vmem>>, vector<1x8x22xf32>
    %77 = vector.shape_cast %76 : vector<1x8x22xf32> to vector<8x22xf32>
    %78 = vector.shape_cast %75 : vector<8x22xf32> to vector<1x8x22xf32>
    tpu.vector_store %arg5[%c1, %c0_31, %c0_32], %78 {strides = array<i32>} : memref<9x8x22xf32, #tpu.memory_space<vmem>>, vector<1x8x22xf32>,
    %79 = arith.mulf %54, %56 : vector<8x128xf32>
    %80 = arith.mulf %79, %60 : vector<8x128xf32>
    %81 = arith.mulf %55, %58 : vector<8x128xf32>
    %82 = arith.addf %80, %81 : vector<8x128xf32>
    %83 = vector.extract_strided_slice %82 {offsets = [0, 0], sizes = [8, 22], strides = [1, 1]} : vector<8x128xf32> to vector<8x22xf32>
    %c2 = arith.constant 2 : index
    %c0_33 = arith.constant 0 : index
    %c0_34 = arith.constant 0 : index
    %84 = vector.load %arg5[%c2, %c0_33, %c0_34] : memref<9x8x22xf32, #tpu.memory_space<vmem>>, vector<1x8x22xf32>
    %85 = vector.shape_cast %84 : vector<1x8x22xf32> to vector<8x22xf32>
    %86 = vector.shape_cast %83 : vector<8x22xf32> to vector<1x8x22xf32>
    tpu.vector_store %arg5[%c2, %c0_33, %c0_34], %86 {strides = array<i32>} : memref<9x8x22xf32, #tpu.memory_space<vmem>>, vector<1x8x22xf32>,
    %87 = arith.mulf %54, %55 : vector<8x128xf32>
    %88 = arith.mulf %87, %60 : vector<8x128xf32>
    %89 = arith.mulf %56, %58 : vector<8x128xf32>
    %90 = arith.addf %88, %89 : vector<8x128xf32>
    %91 = vector.extract_strided_slice %90 {offsets = [0, 0], sizes = [8, 22], strides = [1, 1]} : vector<8x128xf32> to vector<8x22xf32>
    %c3 = arith.constant 3 : index
    %c0_35 = arith.constant 0 : index
    %c0_36 = arith.constant 0 : index
    %92 = vector.load %arg5[%c3, %c0_35, %c0_36] : memref<9x8x22xf32, #tpu.memory_space<vmem>>, vector<1x8x22xf32>
    %93 = vector.shape_cast %92 : vector<1x8x22xf32> to vector<8x22xf32>
    %94 = vector.shape_cast %91 : vector<8x22xf32> to vector<1x8x22xf32>
    tpu.vector_store %arg5[%c3, %c0_35, %c0_36], %94 {strides = array<i32>} : memref<9x8x22xf32, #tpu.memory_space<vmem>>, vector<1x8x22xf32>,
    %95 = arith.mulf %55, %55 : vector<8x128xf32>
    %96 = arith.mulf %55, %55 : vector<8x128xf32>
    %cst_37 = arith.constant 1.000000e+00 : f32
    %97 = vector.broadcast %cst_37 : f32 to vector<8x128xf32>
    %98 = arith.subf %97, %96 : vector<8x128xf32>
    %99 = arith.mulf %98, %57 : vector<8x128xf32>
    %100 = arith.addf %95, %99 : vector<8x128xf32>
    %101 = vector.extract_strided_slice %100 {offsets = [0, 0], sizes = [8, 22], strides = [1, 1]} : vector<8x128xf32> to vector<8x22xf32>
    %c4 = arith.constant 4 : index
    %c0_38 = arith.constant 0 : index
    %c0_39 = arith.constant 0 : index
    %102 = vector.load %arg5[%c4, %c0_38, %c0_39] : memref<9x8x22xf32, #tpu.memory_space<vmem>>, vector<1x8x22xf32>
    %103 = vector.shape_cast %102 : vector<1x8x22xf32> to vector<8x22xf32>
    %104 = vector.shape_cast %101 : vector<8x22xf32> to vector<1x8x22xf32>
    tpu.vector_store %arg5[%c4, %c0_38, %c0_39], %104 {strides = array<i32>} : memref<9x8x22xf32, #tpu.memory_space<vmem>>, vector<1x8x22xf32>,
    %105 = arith.mulf %55, %56 : vector<8x128xf32>
    %106 = arith.mulf %105, %60 : vector<8x128xf32>
    %107 = arith.mulf %54, %58 : vector<8x128xf32>
    %108 = arith.subf %106, %107 : vector<8x128xf32>
    %109 = vector.extract_strided_slice %108 {offsets = [0, 0], sizes = [8, 22], strides = [1, 1]} : vector<8x128xf32> to vector<8x22xf32>
    %c5 = arith.constant 5 : index
    %c0_40 = arith.constant 0 : index
    %c0_41 = arith.constant 0 : index
    %110 = vector.load %arg5[%c5, %c0_40, %c0_41] : memref<9x8x22xf32, #tpu.memory_space<vmem>>, vector<1x8x22xf32>
    %111 = vector.shape_cast %110 : vector<1x8x22xf32> to vector<8x22xf32>
    %112 = vector.shape_cast %109 : vector<8x22xf32> to vector<1x8x22xf32>
    tpu.vector_store %arg5[%c5, %c0_40, %c0_41], %112 {strides = array<i32>} : memref<9x8x22xf32, #tpu.memory_space<vmem>>, vector<1x8x22xf32>,
    %113 = arith.mulf %54, %56 : vector<8x128xf32>
    %114 = arith.mulf %113, %60 : vector<8x128xf32>
    %115 = arith.mulf %55, %58 : vector<8x128xf32>
    %116 = arith.subf %114, %115 : vector<8x128xf32>
    %117 = vector.extract_strided_slice %116 {offsets = [0, 0], sizes = [8, 22], strides = [1, 1]} : vector<8x128xf32> to vector<8x22xf32>
    %c6 = arith.constant 6 : index
    %c0_42 = arith.constant 0 : index
    %c0_43 = arith.constant 0 : index
    %118 = vector.load %arg5[%c6, %c0_42, %c0_43] : memref<9x8x22xf32, #tpu.memory_space<vmem>>, vector<1x8x22xf32>
    %119 = vector.shape_cast %118 : vector<1x8x22xf32> to vector<8x22xf32>
    %120 = vector.shape_cast %117 : vector<8x22xf32> to vector<1x8x22xf32>
    tpu.vector_store %arg5[%c6, %c0_42, %c0_43], %120 {strides = array<i32>} : memref<9x8x22xf32, #tpu.memory_space<vmem>>, vector<1x8x22xf32>,
    %121 = arith.mulf %55, %56 : vector<8x128xf32>
    %122 = arith.mulf %121, %60 : vector<8x128xf32>
    %123 = arith.mulf %54, %58 : vector<8x128xf32>
    %124 = arith.addf %122, %123 : vector<8x128xf32>
    %125 = vector.extract_strided_slice %124 {offsets = [0, 0], sizes = [8, 22], strides = [1, 1]} : vector<8x128xf32> to vector<8x22xf32>
    %c7 = arith.constant 7 : index
    %c0_44 = arith.constant 0 : index
    %c0_45 = arith.constant 0 : index
    %126 = vector.load %arg5[%c7, %c0_44, %c0_45] : memref<9x8x22xf32, #tpu.memory_space<vmem>>, vector<1x8x22xf32>
    %127 = vector.shape_cast %126 : vector<1x8x22xf32> to vector<8x22xf32>
    %128 = vector.shape_cast %125 : vector<8x22xf32> to vector<1x8x22xf32>
    tpu.vector_store %arg5[%c7, %c0_44, %c0_45], %128 {strides = array<i32>} : memref<9x8x22xf32, #tpu.memory_space<vmem>>, vector<1x8x22xf32>,
    %129 = arith.mulf %56, %56 : vector<8x128xf32>
    %130 = arith.mulf %56, %56 : vector<8x128xf32>
    %cst_46 = arith.constant 1.000000e+00 : f32
    %131 = vector.broadcast %cst_46 : f32 to vector<8x128xf32>
    %132 = arith.subf %131, %130 : vector<8x128xf32>
    %133 = arith.mulf %132, %57 : vector<8x128xf32>
    %134 = arith.addf %129, %133 : vector<8x128xf32>
    %135 = vector.extract_strided_slice %134 {offsets = [0, 0], sizes = [8, 22], strides = [1, 1]} : vector<8x128xf32> to vector<8x22xf32>
    %c8 = arith.constant 8 : index
    %c0_47 = arith.constant 0 : index
    %c0_48 = arith.constant 0 : index
    %136 = vector.load %arg5[%c8, %c0_47, %c0_48] : memref<9x8x22xf32, #tpu.memory_space<vmem>>, vector<1x8x22xf32>
    %137 = vector.shape_cast %136 : vector<1x8x22xf32> to vector<8x22xf32>
    %138 = vector.shape_cast %135 : vector<8x22xf32> to vector<1x8x22xf32>
    tpu.vector_store %arg5[%c8, %c0_47, %c0_48], %138 {strides = array<i32>} : memref<9x8x22xf32, #tpu.memory_space<vmem>>, vector<1x8x22xf32>,
    %c0_49 = arith.constant 0 : index
    %c384 = arith.constant 384 : index
    %139 = vector.load %arg3[%c0_49, %c384] : memref<256x512xbf16, #tpu.memory_space<vmem>>, vector<256x128xbf16>
    %cst_50 = arith.constant dense<0.000000e+00> : vector<8x128xf32>
    %140 = tpu.matmul %36, %139, %cst_50 {dimension_numbers = #tpu.dot_dimension_numbers<[1], [0], [0], [1], [0, 0, 1, 1], [], []>} : vector<8x256xbf16>, vector<256x128xbf16>, vector<8x128xf32> -> vector<8x128xf32>
    %c0_51 = arith.constant 0 : index
    %c1664 = arith.constant 1664 : index
    %141 = vector.load %arg4[%c0_51, %c1664] : memref<1x1792xf32, #tpu.memory_space<vmem>>, vector<1x128xf32>
    %142 = vector.broadcast %141 : vector<1x128xf32> to vector<8x128xf32>
    %143 = arith.addf %140, %142 : vector<8x128xf32>
    %144 = vector.extract_strided_slice %143 {offsets = [0, 0], sizes = [8, 66], strides = [1, 1]} : vector<8x128xf32> to vector<8x66xf32>
    %c0_52 = arith.constant 0 : index
    %c0_53 = arith.constant 0 : index
    %145 = vector.load %arg6[%c0_52, %c0_53] : memref<8x66xf32, #tpu.memory_space<vmem>>, vector<8x66xf32>
    tpu.vector_store %arg6[%c0_52, %c0_53], %144 {strides = array<i32>} : memref<8x66xf32, #tpu.memory_space<vmem>>, vector<8x66xf32>,
    return
  }
}

</mosaic_0001>

<bundles_post_ra>
// kernel: body_pose_refiner.1
= control target key start
LH: loop header
LB: loop body
LE: loop exit
PB: predicated region body
PF: predicated region fallthrough
CT: control target
= control target key end

     0   :  { %12 = vsyncpa [#allocation3], 0  ;;  %s2811_s0 = inlined_call_operand.hbm [shape: f32[8,69], index: 0, kind: input, shape index: {}]   ;;  %s2812_s1 = inlined_call_operand.hbm [shape: bf16[69,256], index: 1, kind: input, shape index: {}]   ;;  %s2813_s2 = inlined_call_operand.hbm [shape: bf16[256,1024], index: 2, kind: input, shape index: {}]   ;;  %s2814_s3 = inlined_call_operand.hbm [shape: bf16[256,512], index: 3, kind: input, shape index: {}]   ;;  %s2815_s4 = inlined_call_operand.vmem [shape: f32[1,1792], index: 4, kind: input, shape index: {}]   ;;  %s2816_s5 = inlined_call_operand.hbm [shape: f32[9,8,22], index: 5, kind: output, shape index: {0}]   ;;  %s2817_s6 = inlined_call_operand.vmem [shape: f32[8,66], index: 6, kind: output, shape index: {1}]  }
   0x1   :  { %13 = vsyncpa [#allocation6], 0 }
   0x2   :  { %14 = vsyncpa [#allocation9], 0 }
   0x3   :  { %15 = vsyncpa [#allocation4], 0  ;;  %s2577_s21 = smov [#allocation5]   ;;  %s2459_s25 = scalar_lea.hbm %s2812_s1, 1152 }
   0x4   :  { %s31_s22 = sshll.u32 %s2577_s21, 4  ;;  %p2460_p0 = scmp.ne.s32.totalorder %s2812_s1, %s2459_s25  ;;  %s32_s22 = int_to_ptr.vmem [resolvable:$true] %s31_s22 }
   0x5   :  { %p2463_p1 = scmp.lt.u32.totalorder %s2459_s25, %s2812_s1 }
   0x7   :  { %p2465_p2 = pnand %p2463_p1, %p2460_p0 }
   0x9   :  { %2468 = shalt.err (!%p2465_p2)
}
   0xa   :  { %s2469_s30 = scalar_lea.vmem %s32_s22, 1152  ;;  %p2474_p4 = scmp.lt.s32.totalorder %s32_s22, %s32_s22 }
   0xb   :  { %p2470_p3 = scmp.ne.s32.totalorder %s32_s22, %s2469_s30  ;;  %p2475_p5 = scmp.lt.s32.totalorder %s2469_s30, %s2469_s30 }
   0xd   :  { %p2476_p6 = por %p2475_p5, %p2474_p4 }
   0xf   :  { %p2477_p7 = pnand %p2476_p6, %p2470_p3 }
  0x11   :  { %2480 = shalt.err (!%p2477_p7)
}
  0x12   :  { %s2578_s7 = smov 128   ;;  %s2579_s8 = smov 8  }
  0x13   :  { %37 = dma.hbm_to_vmem [thread:$0]  %s2812_s1, 1152, %s32_s22, [#allocation6], %s2578_s7, %s2578_s7, %s2579_s8  }
  0x14   :  { %s2580_s11 = smov [#allocation2]   ;;  %s2581_s13 = smov [#allocation7]  }
  0x15   :  { %s22_s12 = sshll.u32 %s2580_s11, 4  ;;  %s43_s14 = sshll.u32 %s2581_s13, 4  ;;  %s23_s12 = int_to_ptr.vmem [resolvable:$true] %s22_s12  ;;  %s44_s14 = int_to_ptr.vmem [resolvable:$true] %s43_s14 }
  0x16   :  { %s2481_s17 = scalar_lea.hbm %s2811_s0, 128 }
  0x17   :  { %p2482_p8 = scmp.ne.s32.totalorder %s2811_s0, %s2481_s17  ;;  %p2485_p9 = scmp.lt.u32.totalorder %s2481_s17, %s2811_s0 }
  0x19   :  { %p2487_p10 = pnand %p2485_p9, %p2482_p8 }
  0x1b   :  { %2490 = shalt.err (!%p2487_p10)
}
  0x1c   :  { %s2491_s1 = scalar_lea.vmem %s23_s12, 128  ;;  %p2496_p12 = scmp.lt.s32.totalorder %s23_s12, %s23_s12 }
  0x1d   :  { %p2492_p11 = scmp.ne.s32.totalorder %s23_s12, %s2491_s1  ;;  %p2497_p13 = scmp.lt.s32.totalorder %s2491_s1, %s2491_s1 }
  0x1f   :  { %p2498_p0 = por %p2497_p13, %p2496_p12 }
  0x21   :  { %p2499_p1 = pnand %p2498_p0, %p2492_p11 }
  0x23   :  { %2502 = shalt.err (!%p2499_p1)
}
  0x24   :  { %25 = dma.hbm_to_vmem [thread:$0]  %s2811_s0, 128, %s23_s12, [#allocation3]  }
  0x25   :  { %s2503_s26 = scalar_lea.hbm %s2813_s2, 16384 }
  0x26   :  { %p2504_p2 = scmp.ne.s32.totalorder %s2813_s2, %s2503_s26  ;;  %p2507_p3 = scmp.lt.u32.totalorder %s2503_s26, %s2813_s2 }
  0x28   :  { %p2509_p4 = pnand %p2507_p3, %p2504_p2 }
  0x2a   :  { %2512 = shalt.err (!%p2509_p4)
}
  0x2b   :  { %s2513_s9 = scalar_lea.vmem %s44_s14, 16384  ;;  %p2518_p6 = scmp.lt.s32.totalorder %s44_s14, %s44_s14 }
  0x2c   :  { %p2514_p5 = scmp.ne.s32.totalorder %s44_s14, %s2513_s9  ;;  %p2519_p7 = scmp.lt.s32.totalorder %s2513_s9, %s2513_s9 }
  0x2e   :  { %p2520_p8 = por %p2519_p7, %p2518_p6 }
  0x30   :  { %p2521_p9 = pnand %p2520_p8, %p2514_p5 }
  0x32   :  { %2524 = shalt.err (!%p2521_p9)
}
  0x33   :  { %s2582_s0 = smov 512   ;;  %s2583_s10 = smov 32  }
  0x34   :  { %49 = dma.hbm_to_vmem [thread:$0]  %s2813_s2, 16384, %s44_s14, [#allocation6], %s2582_s0, %s2582_s0, %s2583_s10  }
  0x35   :  { %s2584_s13 = smov [#allocation8]   ;;  %s2525_s18 = scalar_lea.hbm %s2814_s3, 8192 }
  0x36   :  { %s55_s15 = sshll.u32 %s2584_s13, 4  ;;  %p2526_p10 = scmp.ne.s32.totalorder %s2814_s3, %s2525_s18  ;;  %s56_s15 = int_to_ptr.vmem [resolvable:$true] %s55_s15 }
  0x37   :  { %p2529_p11 = scmp.lt.u32.totalorder %s2525_s18, %s2814_s3 }
  0x39   :  { %p2531_p12 = pnand %p2529_p11, %p2526_p10 }
  0x3b   :  { %2534 = shalt.err (!%p2531_p12)
}
  0x3c   :  { %s2535_s22 = scalar_lea.vmem %s56_s15, 8192  ;;  %p2540_p0 = scmp.lt.s32.totalorder %s56_s15, %s56_s15 }
  0x3d   :  { %p2536_p13 = scmp.ne.s32.totalorder %s56_s15, %s2535_s22  ;;  %p2541_p1 = scmp.lt.s32.totalorder %s2535_s22, %s2535_s22 }
  0x3f   :  { %p2542_p2 = por %p2541_p1, %p2540_p0 }
  0x41   :  { %p2543_p3 = pnand %p2542_p2, %p2536_p13 }
  0x43   :  { %2546 = shalt.err (!%p2543_p3)
}
  0x44   :  { %s2585_s2 = smov 256   ;;  %s2586_s14 = smov 16  }
  0x45   :  { %61 = dma.hbm_to_vmem [thread:$0]  %s2814_s3, 8192, %s56_s15, [#allocation9], %s2585_s2, %s2585_s2, %s2586_s14  }
  0x46   :  { %2569 = dma.done.wait [#allocation3], 128  }
  0x47   :  { %2570 = vsyncadd [#allocation3], 4294967168 }
  0x48   :  { %2571 = dma.done.wait [#allocation6], 17536  }
  0x49   :  { %2572 = vsyncadd [#allocation6], 4294949760 }
  0x4a   :  { %2573 = dma.done.wait [#allocation9], 8192  }
  0x4b   :  { %2574 = vsyncadd [#allocation9], 4294959104  ;;  %v2587_v0 = vmov 0   ;;  %v2359_v1 = vld [vmem:[#allocation5 + $0x4] ss:$8 sps:$4 sm:$0xff]   ;;  %vm149_vm0 = vcmask 1041408  }
  0x4c   :  { %191 = vmatprep.mubr.bf16.mxu0 %v2587_v0  ;;  %v2361_v2 = vld [vmem:[#allocation5] ss:$8 sps:$4 sm:$0xff]   ;;  %159 = vmatprep.subr.bf16.mxu0 %v2359_v1  ;;  %v2362_v3 = vld [vmem:[#allocation5 + $0x14] ss:$8 sps:$4 sm:$0xff]   ;;  %v2364_v4 = vld [vmem:[#allocation5 + $0x10] ss:$8 sps:$4 sm:$0xff]  }
  0x4d   :  { %160 = vmatpush1.bf16.msra.mxu0 %v2361_v2  ;;  %v2365_v5 = vld [vmem:[#allocation5 + $0x24] ss:$8 sps:$4 sm:$0xff]   ;;  %vm150_vm1 = vcmask 1042432   ;;  %v2588_v7 = vmov 65535   ;;  %v2367_v12 = vld [vmem:[#allocation5 + $0x20] ss:$8 sps:$4 sm:$0xff]  }
  0x4e   :  { %161 = vmatprep.subr.bf16.mxu0 %v2362_v3  ;;  %v87_v6 = vld [vmem:[#allocation5 + $0x40] sm:$0x77]  ;;  %v151_v8 = vsel %vm149_vm0, 4294967295, %v2588_v7  ;;  %v204_v9 = vld [vmem:[#allocation7] sm:$0xff]  ;;  %v2368_v16 = vld [vmem:[#allocation5 + $0x34] ss:$8 sps:$4 sm:$0xff]  }
  0x4f   :  { %v205_v10 = vld [vmem:[#allocation7 + $0x20] sm:$0xff]  ;;  %v2089_v17 = vcombine.high %v87_v6, %v87_v6  ;;  %v152_v21 = vsel %vm150_vm1, %v151_v8, 0  ;;  %v2370_v23 = vld [vmem:[#allocation5 + $0x30] ss:$8 sps:$4 sm:$0xff]   ;;  %v2088_v24 = vcombine.low %v87_v6, %v87_v6  ;;  %vm145_vm2 = vcmask 564224  }
  0x50   :  { %v206_v11 = vld [vmem:[#allocation7 + $0x40] sm:$0xff]  ;;  %v2092_v13 = vcombine.high %v204_v9, %v205_v10  ;;  %v2091_v14 = vcombine.low %v204_v9, %v205_v10  ;;  %v77_v29 = vld [vmem:[#allocation2] sm:$0xff]  ;;  %vm2055_vm4 = vcmask 539648  }
  0x51   :  { %162 = vmatpush1.bf16.msra.mxu0 %v2364_v4  ;;  %v207_v15 = vld [vmem:[#allocation7 + $0x60] sm:$0xff]  ;;  %v157_v26 = vand.u32 %v2089_v17, %v152_v21  ;;  %v154_v31 = vand.u32 %v2088_v24, %v152_v21  ;;  %v78_v35 = vpack.c.bf16 %v77_v29, %v77_v29  ;;  %v455_v21 = vld [vmem:[#allocation7 + $0x48] sm:$0xff] }
  0x52   :  { %163 = vmatprep.subr.bf16.mxu0 %v2365_v5  ;;  %v2094_v18 = vcombine.high %v206_v11, %v207_v15  ;;  %v208_v19 = vld [vmem:[#allocation7 + $0x80] sm:$0xff]  ;;  %408 = vmatprep.subr.bf16.mxu1 %v2092_v13  ;;  %v2093_v22 = vcombine.low %v206_v11, %v207_v15  ;;  %v456_v24 = vld [vmem:[#allocation7 + $0x68] sm:$0xff] }
  0x53   :  { %v209_v20 = vld [vmem:[#allocation7 + $0xa0] sm:$0xff]  ;;  %409 = vmatpush1.bf16.msra.mxu1 %v2091_v14 }
  0x54   :  { %410 = vmatprep.subr.bf16.mxu1 %v2094_v18  ;;  %v2096_v25 = vcombine.high %v208_v19, %v209_v20  ;;  %v210_v27 = vld [vmem:[#allocation7 + $0xc0] sm:$0xff]  ;;  %v2095_v30 = vcombine.low %v208_v19, %v209_v20  ;;  %v453_v19 = vld [vmem:[#allocation7 + $0x8] sm:$0xff] }
  0x55   :  { %164 = vmatpush1.bf16.msra.mxu0 %v2367_v12  ;;  %v211_v28 = vld [vmem:[#allocation7 + $0xe0] sm:$0xff]  ;;  %v454_v20 = vld [vmem:[#allocation7 + $0x28] sm:$0xff] }
  0x56   :  { %165 = vmatprep.subr.bf16.mxu0 %v2368_v16  ;;  %v2098_v32 = vcombine.high %v210_v27, %v211_v28  ;;  %v212_v33 = vld [vmem:[#allocation7 + $0x100] sm:$0xff]  ;;  %v2097_v36 = vcombine.low %v210_v27, %v211_v28  ;;  %v458_v27 = vld [vmem:[#allocation7 + $0xa8] sm:$0xff]  ;;  %v2125_v28 = vcombine.low %v455_v21, %v456_v24 }
  0x57   :  { %411 = vmatpush1.bf16.msra.mxu1 %v2093_v22  ;;  %v213_v34 = vld [vmem:[#allocation7 + $0x120] sm:$0xff]  ;;  %v2123_v22 = vcombine.low %v453_v19, %v454_v20 }
  0x58   :  { %412 = vmatprep.subr.bf16.mxu1 %v2096_v25  ;;  %v214_v37 = vld [vmem:[#allocation7 + $0x140] sm:$0xff]  ;;  %v2100_v39 = vcombine.high %v212_v33, %v213_v34  ;;  %v2099_v40 = vcombine.low %v212_v33, %v213_v34  ;;  %v2126_v25 = vcombine.high %v455_v21, %v456_v24  ;;  %v461_v34 = vld [vmem:[#allocation7 + $0x108] sm:$0xff] }
  0x59   :  { %166 = vmatpush1.bf16.msra.mxu0 %v2370_v23  ;;  %v215_v38 = vld [vmem:[#allocation7 + $0x160] sm:$0xff]  ;;  %v2124_v23 = vcombine.high %v453_v19, %v454_v20 }
  0x5a   :  { %167 = vmatprep.subr.bf16.mxu0 %v157_v26  ;;  %v216_v41 = vld [vmem:[#allocation7 + $0x180] sm:$0xff]  ;;  %v2102_v43 = vcombine.high %v214_v37, %v215_v38  ;;  %v2101_v44 = vcombine.low %v214_v37, %v215_v38  ;;  %v457_v26 = vld [vmem:[#allocation7 + $0x88] sm:$0xff] }
  0x5b   :  { %413 = vmatpush1.bf16.msra.mxu1 %v2095_v30  ;;  %v217_v42 = vld [vmem:[#allocation7 + $0x1a0] sm:$0xff]  ;;  %v2128_v29 = vcombine.high %v457_v26, %v458_v27  ;;  %v459_v30 = vld [vmem:[#allocation7 + $0xc8] sm:$0xff] }
  0x5c   :  { %414 = vmatprep.subr.bf16.mxu1 %v2098_v32  ;;  %v218_v45 = vld [vmem:[#allocation7 + $0x1c0] sm:$0xff]  ;;  %v2104_v47 = vcombine.high %v216_v41, %v217_v42  ;;  %v2103_v48 = vcombine.low %v216_v41, %v217_v42  ;;  %v2127_v32 = vcombine.low %v457_v26, %v458_v27  ;;  %v463_v38 = vld [vmem:[#allocation7 + $0x148] sm:$0xff] }
  0x5d   :  { %168 = vmatpush1.bf16.msra.mxu0 %v154_v31  ;;  %v219_v46 = vld [vmem:[#allocation7 + $0x1e0] sm:$0xff]  ;;  %v460_v31 = vld [vmem:[#allocation7 + $0xe8] sm:$0xff] }
  0x5e   :  { %v220_v49 = vld [vmem:[#allocation7 + $0x200] sm:$0xff]  ;;  %v2106_v51 = vcombine.high %v218_v45, %v219_v46  ;;  %v2105_v52 = vcombine.low %v218_v45, %v219_v46  ;;  %657 = vmatprep.subr.bf16.mxu0 %v2124_v23  ;;  %v2130_v33 = vcombine.high %v459_v30, %v460_v31  ;;  %v465_v42 = vld [vmem:[#allocation7 + $0x188] sm:$0xff] }
  0x5f   :  { %415 = vmatpush1.bf16.msra.mxu1 %v2097_v36  ;;  %v221_v50 = vld [vmem:[#allocation7 + $0x220] sm:$0xff]  ;;  %v2129_v36 = vcombine.low %v459_v30, %v460_v31  ;;  %v467_v46 = vld [vmem:[#allocation7 + $0x1c8] sm:$0xff] }
  0x60   :  { %2090 = vmatmul.mubr.msk.bf16.vlgmr.msra.gmra.mrb[0].mxu0 %vm145_vm2, %v78_v35  ;;  %416 = vmatprep.subr.bf16.mxu1 %v2100_v39  ;;  %v222_v53 = vld [vmem:[#allocation7 + $0x240] sm:$0xff]  ;;  %v2108_v55 = vcombine.high %v220_v49, %v221_v50  ;;  %v2107_v56 = vcombine.low %v220_v49, %v221_v50  ;;  %v462_v35 = vld [vmem:[#allocation7 + $0x128] sm:$0xff] }
  0x61   :  { %v223_v54 = vld [vmem:[#allocation7 + $0x260] sm:$0xff]  ;;  %658 = vmatpush1.bf16.msra.mxu0 %v2123_v22  ;;  %v2132_v37 = vcombine.high %v461_v34, %v462_v35  ;;  %v464_v39 = vld [vmem:[#allocation7 + $0x168] sm:$0xff] }
  0x62   :  { %v224_v57 = vld [vmem:[#allocation7 + $0x280] sm:$0xff]  ;;  %v2110_v59 = vcombine.high %v222_v53, %v223_v54  ;;  %v2109_v60 = vcombine.low %v222_v53, %v223_v54  ;;  %659 = vmatprep.subr.bf16.mxu0 %v2126_v25  ;;  %v2134_v41 = vcombine.high %v463_v38, %v464_v39  ;;  %v469_v50 = vld [vmem:[#allocation7 + $0x208] sm:$0xff] }
  0x63   :  { %417 = vmatpush1.bf16.msra.mxu1 %v2099_v40  ;;  %v225_v58 = vld [vmem:[#allocation7 + $0x2a0] sm:$0xff]  ;;  %v2131_v40 = vcombine.low %v461_v34, %v462_v35  ;;  %v471_v54 = vld [vmem:[#allocation7 + $0x248] sm:$0xff] }
  0x64   :  { %418 = vmatprep.subr.bf16.mxu1 %v2102_v43  ;;  %v226_v61 = vld [vmem:[#allocation7 + $0x2c0] sm:$0xff]  ;;  %v2112_v63 = vcombine.high %v224_v57, %v225_v58  ;;  %v2111_v0 = vcombine.low %v224_v57, %v225_v58  ;;  %v466_v43 = vld [vmem:[#allocation7 + $0x1a8] sm:$0xff] }
  0x65   :  { %v227_v62 = vld [vmem:[#allocation7 + $0x2e0] sm:$0xff]  ;;  %660 = vmatpush1.bf16.msra.mxu0 %v2125_v28  ;;  %v2136_v45 = vcombine.high %v465_v42, %v466_v43  ;;  %v473_v58 = vld [vmem:[#allocation7 + $0x288] sm:$0xff] }
  0x66   :  { %v2114_v1 = vcombine.high %v226_v61, %v227_v62  ;;  %v228_v2 = vld [vmem:[#allocation7 + $0x300] sm:$0xff]  ;;  %v2113_v4 = vcombine.low %v226_v61, %v227_v62  ;;  %661 = vmatprep.subr.bf16.mxu0 %v2128_v29  ;;  %v475_v62 = vld [vmem:[#allocation7 + $0x2c8] sm:$0xff] }
  0x67   :  { %419 = vmatpush1.bf16.msra.mxu1 %v2101_v44  ;;  %v229_v3 = vld [vmem:[#allocation7 + $0x320] sm:$0xff]  ;;  %v2133_v44 = vcombine.low %v463_v38, %v464_v39  ;;  %v481_v28 = vld [vmem:[#allocation7 + $0x388] sm:$0xff]  ;;  %v2696_v38 = vld [vmem:[#allocation7 + $0x18] sm:$0xff] }
  0x68   :  { %420 = vmatprep.subr.bf16.mxu1 %v2104_v47  ;;  %v2116_v5 = vcombine.high %v228_v2, %v229_v3  ;;  %v230_v6 = vld [vmem:[#allocation7 + $0x340] sm:$0xff]  ;;  %v2115_v8 = vcombine.low %v228_v2, %v229_v3  ;;  %v468_v47 = vld [vmem:[#allocation7 + $0x1e8] sm:$0xff] }
  0x69   :  { %v231_v7 = vld [vmem:[#allocation7 + $0x360] sm:$0xff]  ;;  %662 = vmatpush1.bf16.msra.mxu0 %v2127_v32  ;;  %v2138_v49 = vcombine.high %v467_v46, %v468_v47  ;;  %v477_v2 = vld [vmem:[#allocation7 + $0x308] sm:$0xff] }
  0x6a   :  { %v2118_v9 = vcombine.high %v230_v6, %v231_v7  ;;  %v2117_v10 = vcombine.low %v230_v6, %v231_v7  ;;  %v232_v11 = vld [vmem:[#allocation7 + $0x380] sm:$0xff]  ;;  %663 = vmatprep.subr.bf16.mxu0 %v2130_v33  ;;  %v478_v3 = vld [vmem:[#allocation7 + $0x328] sm:$0xff] }
  0x6b   :  { %421 = vmatpush1.bf16.msra.mxu1 %v2103_v48  ;;  %v233_v12 = vld [vmem:[#allocation7 + $0x3a0] sm:$0xff]  ;;  %v2135_v48 = vcombine.low %v465_v42, %v466_v43  ;;  %v479_v6 = vld [vmem:[#allocation7 + $0x348] sm:$0xff]  ;;  %v706_v42 = vld [vmem:[#allocation7 + $0x50] sm:$0xff] }
  0x6c   :  { %422 = vmatprep.subr.bf16.mxu1 %v2106_v51  ;;  %v2120_v13 = vcombine.high %v232_v11, %v233_v12  ;;  %v2119_v14 = vcombine.low %v232_v11, %v233_v12  ;;  %v234_v15 = vld [vmem:[#allocation7 + $0x3c0] sm:$0xff]  ;;  %v470_v51 = vld [vmem:[#allocation7 + $0x228] sm:$0xff]  ;;  %v90_v11 = vlaneseq  ;;  %v708_v43 = vld [vmem:[#allocation7 + $0x70] sm:$0xff] }
  0x6d   :  { %v235_v16 = vld [vmem:[#allocation7 + $0x3e0] sm:$0xff]  ;;  %664 = vmatpush1.bf16.msra.mxu0 %v2129_v36  ;;  %v2140_v53 = vcombine.high %v469_v50, %v470_v51  ;;  %v480_v7 = vld [vmem:[#allocation7 + $0x368] sm:$0xff]  ;;  %v702_v36 = vld [vmem:[#allocation7 + $0x10] sm:$0xff] }
  0x6e   :  { %v2122_v17 = vcombine.high %v234_v15, %v235_v16  ;;  %v2121_v18 = vcombine.low %v234_v15, %v235_v16  ;;  %665 = vmatprep.subr.bf16.mxu0 %v2132_v37  ;;  %v2683_v12 = vshrl.u32 %v90_v11, 7  ;;  %v482_v29 = vld [vmem:[#allocation7 + $0x3a8] sm:$0xff]  ;;  %v704_v37 = vld [vmem:[#allocation7 + $0x30] sm:$0xff] }
  0x6f   :  { %423 = vmatpush1.bf16.msra.mxu1 %v2105_v52  ;;  %v2137_v52 = vcombine.low %v467_v46, %v468_v47  ;;  %v2152_v30 = vcombine.high %v481_v28, %v482_v29  ;;  %v2151_v31 = vcombine.low %v481_v28, %v482_v29  ;;  %v483_v32 = vld [vmem:[#allocation7 + $0x3c8] sm:$0xff]  ;;  %v2155_v39 = vcombine.low %v702_v36, %v704_v37  ;;  %v752_v28 = vld [vmem:[#allocation7 + $0x330] sm:$0xff] }
  0x70   :  { %424 = vmatprep.subr.bf16.mxu1 %v2108_v55  ;;  %v472_v55 = vld [vmem:[#allocation7 + $0x268] sm:$0xff]  ;;  %v2692_v15 = vsub.s32 1, %v2683_v12  ;;  %v2160_v46 = vcombine.high %v706_v42, %v708_v43  ;;  %v2159_v47 = vcombine.low %v706_v42, %v708_v43 }
  0x71   :  { %666 = vmatpush1.bf16.msra.mxu0 %v2131_v40  ;;  %v2142_v57 = vcombine.high %v471_v54, %v472_v55  ;;  %v484_v33 = vld [vmem:[#allocation7 + $0x3e8] sm:$0xff]  ;;  %v2156_v40 = vcombine.high %v702_v36, %v704_v37 }
  0x72   :  { %667 = vmatprep.subr.bf16.mxu0 %v2134_v41  ;;  %v2154_v34 = vcombine.high %v483_v32, %v484_v33  ;;  %v2153_v35 = vcombine.low %v483_v32, %v484_v33  ;;  %v2698_v41 = vld [vmem:[#allocation7 + $0x38] sm:$0xff]  ;;  %v756_v32 = vld [vmem:[#allocation7 + $0x370] sm:$0xff] }
  0x73   :  { %425 = vmatpush1.bf16.msra.mxu1 %v2107_v56  ;;  %v2139_v56 = vcombine.low %v469_v50, %v470_v51 }
  0x74   :  { %426 = vmatprep.subr.bf16.mxu1 %v2110_v59  ;;  %v474_v59 = vld [vmem:[#allocation7 + $0x2a8] sm:$0xff] }
  0x75   :  { %668 = vmatpush1.bf16.msra.mxu0 %v2133_v44  ;;  %v2144_v61 = vcombine.high %v473_v58, %v474_v59  ;;  %v2157_v44 = vcombine.low %v2696_v38, %v2698_v41 }
  0x76   :  { %669 = vmatprep.subr.bf16.mxu0 %v2136_v45  ;;  %v2158_v45 = vcombine.high %v2696_v38, %v2698_v41 }
  0x77   :  { %427 = vmatpush1.bf16.msra.mxu1 %v2109_v60  ;;  %v2141_v60 = vcombine.low %v471_v54, %v472_v55 }
  0x78   :  { %428 = vmatprep.subr.bf16.mxu1 %v2112_v63  ;;  %v476_v63 = vld [vmem:[#allocation7 + $0x2e8] sm:$0xff] }
  0x79   :  { %670 = vmatpush1.bf16.msra.mxu0 %v2135_v48  ;;  %v710_v48 = vld [vmem:[#allocation7 + $0x90] sm:$0xff] }
  0x7a   :  { %671 = vmatprep.subr.bf16.mxu0 %v2138_v49  ;;  %v712_v49 = vld [vmem:[#allocation7 + $0xb0] sm:$0xff] }
  0x7b   :  { %429 = vmatpush1.bf16.msra.mxu1 %v2111_v0  ;;  %v2143_v0 = vcombine.low %v473_v58, %v474_v59  ;;  %v2164_v50 = vcombine.high %v710_v48, %v712_v49  ;;  %v2163_v51 = vcombine.low %v710_v48, %v712_v49  ;;  %v707_v49 = vld [vmem:[#allocation7 + $0x58] sm:$0xff] }
  0x7c   :  { %430 = vmatprep.subr.bf16.mxu1 %v2114_v1  ;;  %v2146_v1 = vcombine.high %v475_v62, %v476_v63 }
  0x7d   :  { %672 = vmatpush1.bf16.msra.mxu0 %v2137_v52  ;;  %v714_v52 = vld [vmem:[#allocation7 + $0xd0] sm:$0xff] }
  0x7e   :  { %673 = vmatprep.subr.bf16.mxu0 %v2140_v53  ;;  %v716_v53 = vld [vmem:[#allocation7 + $0xf0] sm:$0xff] }
  0x7f   :  { %431 = vmatpush1.bf16.msra.mxu1 %v2113_v4  ;;  %v2145_v4 = vcombine.low %v475_v62, %v476_v63  ;;  %v2168_v54 = vcombine.high %v714_v52, %v716_v53  ;;  %v2167_v55 = vcombine.low %v714_v52, %v716_v53 }
  0x80   :  { %432 = vmatprep.subr.bf16.mxu1 %v2116_v5  ;;  %v2148_v5 = vcombine.high %v477_v2, %v478_v3 }
  0x81   :  { %674 = vmatpush1.bf16.msra.mxu0 %v2139_v56  ;;  %v718_v56 = vld [vmem:[#allocation7 + $0x110] sm:$0xff] }
  0x82   :  { %675 = vmatprep.subr.bf16.mxu0 %v2142_v57  ;;  %v720_v57 = vld [vmem:[#allocation7 + $0x130] sm:$0xff] }
  0x83   :  { %433 = vmatpush1.bf16.msra.mxu1 %v2115_v8  ;;  %v2147_v8 = vcombine.low %v477_v2, %v478_v3  ;;  %v2172_v58 = vcombine.high %v718_v56, %v720_v57  ;;  %v2171_v59 = vcombine.low %v718_v56, %v720_v57 }
  0x84   :  { %434 = vmatprep.subr.bf16.mxu1 %v2118_v9  ;;  %v2150_v9 = vcombine.high %v479_v6, %v480_v7 }
  0x85   :  { %676 = vmatpush1.bf16.msra.mxu0 %v2141_v60  ;;  %v722_v60 = vld [vmem:[#allocation7 + $0x150] sm:$0xff] }
  0x86   :  { %677 = vmatprep.subr.bf16.mxu0 %v2144_v61  ;;  %v724_v61 = vld [vmem:[#allocation7 + $0x170] sm:$0xff] }
  0x87   :  { %435 = vmatpush1.bf16.msra.mxu1 %v2117_v10  ;;  %v2149_v10 = vcombine.low %v479_v6, %v480_v7  ;;  %v2176_v62 = vcombine.high %v722_v60, %v724_v61  ;;  %v2175_v63 = vcombine.low %v722_v60, %v724_v61 }
  0x88   :  { %436 = vmatprep.subr.bf16.mxu1 %v2120_v13  ;;  %v2686_v13 = vsub.s32 0, %v2683_v12 }
  0x89   :  { %678 = vmatpush1.bf16.msra.mxu0 %v2143_v0  ;;  %v726_v0 = vld [vmem:[#allocation7 + $0x190] sm:$0xff] }
  0x8a   :  { %679 = vmatprep.subr.bf16.mxu0 %v2146_v1  ;;  %v728_v1 = vld [vmem:[#allocation7 + $0x1b0] sm:$0xff] }
  0x8b   :  { %437 = vmatpush1.bf16.msra.mxu1 %v2119_v14  ;;  %v88_v14 = vld [vmem:[%s2815_s4] sm:$0x3]  ;;  %v2180_v2 = vcombine.high %v726_v0, %v728_v1  ;;  %v2179_v3 = vcombine.low %v726_v0, %v728_v1 }
  0x8c   :  { %438 = vmatprep.subr.bf16.mxu1 %v2122_v17  ;;  %v93_v16 = vrot.slane %v88_v14, %v2686_v13  ;;  %v97_v17 = vrot.slane %v88_v14, %v2692_v15  ;;  %v738_v14 = vld [vmem:[#allocation7 + $0x250] sm:$0xff] }
  0x8d   :  { %680 = vmatpush1.bf16.msra.mxu0 %v2145_v4  ;;  %v730_v4 = vld [vmem:[#allocation7 + $0x1d0] sm:$0xff] }
  0x8e   :  { %681 = vmatprep.subr.bf16.mxu0 %v2148_v5  ;;  %v732_v5 = vld [vmem:[#allocation7 + $0x1f0] sm:$0xff] }
  0x8f   :  { %439 = vmatpush1.bf16.msra.mxu1 %v2121_v18  ;;  %v2184_v6 = vcombine.high %v730_v4, %v732_v5  ;;  %v2183_v7 = vcombine.low %v730_v4, %v732_v5  ;;  %v729_v4 = vld [vmem:[#allocation7 + $0x1b8] sm:$0xff] }
  0x90   :  { %1108 = vmatprep.subr.bf16.mxu1 %v2156_v40 }
  0x91   :  { %682 = vmatpush1.bf16.msra.mxu0 %v2147_v8  ;;  %v734_v8 = vld [vmem:[#allocation7 + $0x210] sm:$0xff] }
  0x92   :  { %683 = vmatprep.subr.bf16.mxu0 %v2150_v9  ;;  %v736_v9 = vld [vmem:[#allocation7 + $0x230] sm:$0xff] }
  0x93   :  { %v2187_v11 = vcombine.low %v734_v8, %v736_v9 }
  0x95   :  { %684 = vmatpush1.bf16.msra.mxu0 %v2149_v10  ;;  %v2188_v10 = vcombine.high %v734_v8, %v736_v9  ;;  %v733_v8 = vld [vmem:[#allocation7 + $0x1f8] sm:$0xff] }
  0x96   :  { %685 = vmatprep.subr.bf16.mxu0 %v2152_v30 }
  0x99   :  { %686 = vmatpush1.bf16.msra.mxu0 %v2151_v31  ;;  %v754_v31 = vld [vmem:[#allocation7 + $0x350] sm:$0xff] }
  0x9a   :  { %687 = vmatprep.subr.bf16.mxu0 %v2154_v34  ;;  %v2208_v33 = vcombine.high %v754_v31, %v756_v32  ;;  %v2207_v34 = vcombine.low %v754_v31, %v756_v32  ;;  %v753_v31 = vld [vmem:[#allocation7 + $0x338] sm:$0xff] }
  0x9d   :  { %688 = vmatpush1.bf16.msra.mxu0 %v2153_v35  ;;  %v236_v35 = vld [vmem:[%s2815_s4 + $0x2] sm:$0x3] }
  0x9e   :  { %1149 = vmatprep.subr.bf16.mxu0 %v2158_v45  ;;  %v241_v36 = vrot.slane %v236_v35, %v2686_v13  ;;  %v245_v37 = vrot.slane %v236_v35, %v2692_v15  ;;  %v757_v35 = vld [vmem:[#allocation7 + $0x378] sm:$0xff] }
 0x133   :  { %v193_v18 = vpop.f32.mrb[0].mxu0 }
 0x134   :  { %v194_v19 = vadd.f32 %v193_v18, %v93_v16  ;;  %v195_v20 = vpop.f32.mrb[1].mxu0  ;;  %v740_v16 = vld [vmem:[#allocation7 + $0x270] sm:$0xff] }
 0x135   :  { %v196_v21 = vadd.f32 %v195_v20, %v97_v17  ;;  %v197_v22 = vpop.f32.mrb[2].mxu0  ;;  %v2192_v17 = vcombine.high %v738_v14, %v740_v16  ;;  %v2191_v18 = vcombine.low %v738_v14, %v740_v16  ;;  %v744_v20 = vld [vmem:[#allocation7 + $0x2b0] sm:$0xff]  ;;  %v737_v14 = vld [vmem:[#allocation7 + $0x238] sm:$0xff] }
 0x136   :  { %v200_v23 = vmax.f32 %v194_v19, 0.0  ;;  %v198_v24 = vpop.f32.mrb[3].mxu0  ;;  %v742_v19 = vld [vmem:[#allocation7 + $0x290] sm:$0xff] }
 0x137   :  { %v201_v25 = vmax.f32 %v196_v21, 0.0  ;;  %v2196_v21 = vcombine.high %v742_v19, %v744_v20  ;;  %v2195_v22 = vcombine.low %v742_v19, %v744_v20  ;;  %v748_v24 = vld [vmem:[#allocation7 + $0x2f0] sm:$0xff]  ;;  %v741_v19 = vld [vmem:[#allocation7 + $0x278] sm:$0xff] }
 0x138   :  { %v202_v27 = vpack.c.bf16 %v200_v23, %v200_v23  ;;  %v746_v23 = vld [vmem:[#allocation7 + $0x2d0] sm:$0xff] }
 0x139   :  { %v203_v26 = vpack.c.bf16 %v201_v25, %v201_v25  ;;  %v2200_v25 = vcombine.high %v746_v23, %v748_v24 }
 0x13b   :  { %440 = vmatprep.mubr.bf16.mxu1 %v203_v26  ;;  %v2199_v26 = vcombine.low %v746_v23, %v748_v24  ;;  %v745_v23 = vld [vmem:[#allocation7 + $0x2b8] sm:$0xff] }
 0x13c   :  { %441 = vmatmul.mubr.bf16.vlgmr.msra.gmra.mrb[0].mxu1 %v202_v27  ;;  %v750_v27 = vld [vmem:[#allocation7 + $0x310] sm:$0xff] }
 0x13d   :  { %1109 = vmatpush1.bf16.msra.mxu1 %v2155_v39  ;;  %v2204_v29 = vcombine.high %v750_v27, %v752_v28  ;;  %v2203_v30 = vcombine.low %v750_v27, %v752_v28  ;;  %v749_v27 = vld [vmem:[#allocation7 + $0x2f8] sm:$0xff] }
 0x13e   :  { %1110 = vmatprep.subr.bf16.mxu1 %v2160_v46 }
 0x141   :  { %1111 = vmatpush1.bf16.msra.mxu1 %v2159_v47 }
 0x142   :  { %1112 = vmatprep.subr.bf16.mxu1 %v2164_v50  ;;  %v709_v50 = vld [vmem:[#allocation7 + $0x78] sm:$0xff] }
 0x143   :  { %v2162_v53 = vcombine.high %v707_v49, %v709_v50  ;;  %v2161_v56 = vcombine.low %v707_v49, %v709_v50  ;;  %v762_v50 = vld [vmem:[#allocation7 + $0x3d0] sm:$0xff] }
 0x145   :  { %1113 = vmatpush1.bf16.msra.mxu1 %v2163_v51 }
 0x146   :  { %1114 = vmatprep.subr.bf16.mxu1 %v2168_v54  ;;  %v711_v54 = vld [vmem:[#allocation7 + $0x98] sm:$0xff] }
 0x149   :  { %1115 = vmatpush1.bf16.msra.mxu1 %v2167_v55  ;;  %v713_v55 = vld [vmem:[#allocation7 + $0xb8] sm:$0xff] }
 0x14a   :  { %1116 = vmatprep.subr.bf16.mxu1 %v2172_v58  ;;  %v2166_v57 = vcombine.high %v711_v54, %v713_v55  ;;  %v715_v58 = vld [vmem:[#allocation7 + $0xd8] sm:$0xff]  ;;  %v2165_v60 = vcombine.low %v711_v54, %v713_v55 }
 0x14b   :  { %v765_v54 = vld [vmem:[#allocation7 + $0x3f8] sm:$0xff] }
 0x14d   :  { %1117 = vmatpush1.bf16.msra.mxu1 %v2171_v59  ;;  %v717_v59 = vld [vmem:[#allocation7 + $0xf8] sm:$0xff] }
 0x14e   :  { %1118 = vmatprep.subr.bf16.mxu1 %v2176_v62  ;;  %v2170_v61 = vcombine.high %v715_v58, %v717_v59  ;;  %v719_v62 = vld [vmem:[#allocation7 + $0x118] sm:$0xff]  ;;  %v2169_v0 = vcombine.low %v715_v58, %v717_v59  ;;  %v2375_v58 = vld [vmem:[#allocation8 + $0x4] ss:$16 sps:$4 sm:$0xff]  }
 0x14f   :  { %v2397_v59 = vld [vmem:[#allocation8 + $0x108] ss:$16 sps:$4 sm:$0xff]  }
 0x151   :  { %1119 = vmatpush1.bf16.msra.mxu1 %v2175_v63  ;;  %v721_v63 = vld [vmem:[#allocation7 + $0x138] sm:$0xff] }
 0x152   :  { %1120 = vmatprep.subr.bf16.mxu1 %v2180_v2  ;;  %v2174_v1 = vcombine.high %v719_v62, %v721_v63  ;;  %v723_v2 = vld [vmem:[#allocation7 + $0x158] sm:$0xff]  ;;  %v2173_v38 = vcombine.low %v719_v62, %v721_v63 }
 0x155   :  { %1121 = vmatpush1.bf16.msra.mxu1 %v2179_v3  ;;  %v725_v3 = vld [vmem:[#allocation7 + $0x178] sm:$0xff] }
 0x156   :  { %1122 = vmatprep.subr.bf16.mxu1 %v2184_v6  ;;  %v2178_v41 = vcombine.high %v723_v2, %v725_v3  ;;  %v2177_v5 = vcombine.low %v723_v2, %v725_v3 }
 0x159   :  { %1123 = vmatpush1.bf16.msra.mxu1 %v2183_v7  ;;  %v731_v7 = vld [vmem:[#allocation7 + $0x1d8] sm:$0xff] }
 0x15a   :  { %1124 = vmatprep.subr.bf16.mxu1 %v2188_v10  ;;  %v2186_v10 = vcombine.high %v731_v7, %v733_v8  ;;  %v2185_v16 = vcombine.low %v731_v7, %v733_v8  ;;  %v2378_v8 = vld [vmem:[#allocation8 + $0x24] ss:$16 sps:$4 sm:$0xff]  }
 0x15d   :  { %1125 = vmatpush1.bf16.msra.mxu1 %v2187_v11  ;;  %v735_v11 = vld [vmem:[#allocation7 + $0x218] sm:$0xff] }
 0x15e   :  { %1126 = vmatprep.subr.bf16.mxu1 %v2192_v17  ;;  %v2190_v17 = vcombine.high %v735_v11, %v737_v14  ;;  %v2189_v20 = vcombine.low %v735_v11, %v737_v14  ;;  %v2406_v11 = vld [vmem:[#allocation8 + $0x28] ss:$16 sps:$4 sm:$0xff]   ;;  %v2381_v14 = vld [vmem:[#allocation8 + $0x44] ss:$16 sps:$4 sm:$0xff]  }
 0x161   :  { %1127 = vmatpush1.bf16.msra.mxu1 %v2191_v18  ;;  %v739_v18 = vld [vmem:[#allocation7 + $0x258] sm:$0xff] }
 0x162   :  { %1128 = vmatprep.subr.bf16.mxu1 %v2196_v21  ;;  %v2194_v21 = vcombine.high %v739_v18, %v741_v19  ;;  %v2193_v24 = vcombine.low %v739_v18, %v741_v19  ;;  %v2411_v18 = vld [vmem:[#allocation8 + $0x48] ss:$16 sps:$4 sm:$0xff]   ;;  %v2384_v19 = vld [vmem:[#allocation8 + $0x64] ss:$16 sps:$4 sm:$0xff]  }
 0x165   :  { %1129 = vmatpush1.bf16.msra.mxu1 %v2195_v22  ;;  %v743_v22 = vld [vmem:[#allocation7 + $0x298] sm:$0xff] }
 0x166   :  { %1130 = vmatprep.subr.bf16.mxu1 %v2200_v25  ;;  %v2198_v25 = vcombine.high %v743_v22, %v745_v23  ;;  %v2197_v28 = vcombine.low %v743_v22, %v745_v23  ;;  %v2416_v22 = vld [vmem:[#allocation8 + $0x68] ss:$16 sps:$4 sm:$0xff]   ;;  %v2387_v23 = vld [vmem:[#allocation8 + $0x84] ss:$16 sps:$4 sm:$0xff]  }
 0x169   :  { %1131 = vmatpush1.bf16.msra.mxu1 %v2199_v26  ;;  %v747_v26 = vld [vmem:[#allocation7 + $0x2d8] sm:$0xff] }
 0x16a   :  { %1132 = vmatprep.subr.bf16.mxu1 %v2204_v29  ;;  %v2202_v29 = vcombine.high %v747_v26, %v749_v27  ;;  %v2201_v32 = vcombine.low %v747_v26, %v749_v27  ;;  %v2421_v26 = vld [vmem:[#allocation8 + $0x88] ss:$16 sps:$4 sm:$0xff]   ;;  %v2390_v27 = vld [vmem:[#allocation8 + $0xa4] ss:$16 sps:$4 sm:$0xff]  }
 0x16d   :  { %1133 = vmatpush1.bf16.msra.mxu1 %v2203_v30  ;;  %v751_v30 = vld [vmem:[#allocation7 + $0x318] sm:$0xff] }
 0x16e   :  { %1134 = vmatprep.subr.bf16.mxu1 %v2208_v33  ;;  %v2206_v33 = vcombine.high %v751_v30, %v753_v31 }
 0x171   :  { %1135 = vmatpush1.bf16.msra.mxu1 %v2207_v34  ;;  %v755_v34 = vld [vmem:[#allocation7 + $0x358] sm:$0xff] }
 0x20f   :  { %v442_v39 = vpop.f32.mrb[0].mxu1 }
 0x210   :  { %v443_v40 = vadd.f32 %v442_v39, %v241_v36  ;;  %v444_v42 = vpop.f32.mrb[1].mxu1  ;;  %v2205_v36 = vcombine.low %v751_v30, %v753_v31  ;;  %v2209_v39 = vcombine.low %v755_v34, %v757_v35  ;;  %v2426_v30 = vld [vmem:[#allocation8 + $0xa8] ss:$16 sps:$4 sm:$0xff]   ;;  %v2393_v31 = vld [vmem:[#allocation8 + $0xc4] ss:$16 sps:$4 sm:$0xff]  }
 0x211   :  { %v445_v43 = vadd.f32 %v444_v42, %v245_v37  ;;  %v446_v45 = vpop.f32.mrb[2].mxu1  ;;  %v2210_v37 = vcombine.high %v755_v34, %v757_v35  ;;  %v760_v42 = vld [vmem:[#allocation7 + $0x3b0] sm:$0xff] }
 0x212   :  { %v449_v46 = vmax.f32 %v443_v40, 0.0  ;;  %v447_v47 = vpop.f32.mrb[3].mxu1  ;;  %v758_v40 = vld [vmem:[#allocation7 + $0x390] sm:$0xff] }
 0x213   :  { %v450_v48 = vmax.f32 %v445_v43, 0.0  ;;  %v759_v43 = vld [vmem:[#allocation7 + $0x398] sm:$0xff]  ;;  %v2212_v45 = vcombine.high %v758_v40, %v760_v42  ;;  %v2211_v47 = vcombine.low %v758_v40, %v760_v42  ;;  %v2394_v34 = vld [vmem:[#allocation8 + $0xe0] ss:$16 sps:$4 sm:$0xff]   ;;  %v2400_v35 = vld [vmem:[#allocation8 + $0x104] ss:$16 sps:$4 sm:$0xff]  }
 0x214   :  { %v451_v52 = vpack.c.bf16 %v449_v46, %v449_v46  ;;  %v761_v46 = vld [vmem:[#allocation7 + $0x3b8] sm:$0xff]  ;;  %v2410_v40 = vld [vmem:[#allocation8 + $0x144] ss:$16 sps:$4 sm:$0xff]   ;;  %v2408_v42 = vld [vmem:[#allocation8 + $0x140] ss:$16 sps:$4 sm:$0xff]  }
 0x215   :  { %v452_v51 = vpack.c.bf16 %v450_v48, %v450_v48  ;;  %v2213_v48 = vcombine.low %v759_v43, %v761_v46  ;;  %v2214_v49 = vcombine.high %v759_v43, %v761_v46  ;;  %1136 = vmatprep.subr.bf16.mxu1 %v2212_v45  ;;  %v2415_v43 = vld [vmem:[#allocation8 + $0x164] ss:$16 sps:$4 sm:$0xff]   ;;  %v2413_v45 = vld [vmem:[#allocation8 + $0x160] ss:$16 sps:$4 sm:$0xff]  }
 0x216   :  { %1137 = vmatpush1.bf16.msra.mxu1 %v2211_v47  ;;  %v2420_v46 = vld [vmem:[#allocation8 + $0x184] ss:$16 sps:$4 sm:$0xff]   ;;  %v2418_v47 = vld [vmem:[#allocation8 + $0x180] ss:$16 sps:$4 sm:$0xff]  }
 0x217   :  { %689 = vmatprep.mubr.bf16.mxu0 %v452_v51  ;;  %v764_v51 = vld [vmem:[#allocation7 + $0x3f0] sm:$0xff] }
 0x218   :  { %690 = vmatmul.mubr.bf16.vlgmr.msra.gmra.mrb[4].mxu0 %v451_v52  ;;  %v763_v52 = vld [vmem:[#allocation7 + $0x3d8] sm:$0xff]  ;;  %v2215_v55 = vcombine.low %v762_v50, %v764_v51 }
 0x219   :  { %1150 = vmatpush1.bf16.msra.mxu0 %v2157_v44  ;;  %v727_v44 = vld [vmem:[#allocation7 + $0x198] sm:$0xff] }
 0x21a   :  { %1151 = vmatprep.subr.bf16.mxu0 %v2162_v53  ;;  %v2182_v6 = vcombine.high %v727_v44, %v729_v4  ;;  %v2181_v9 = vcombine.low %v727_v44, %v729_v4  ;;  %v2216_v53 = vcombine.high %v762_v50, %v764_v51  ;;  %v2427_v50 = vld [vmem:[#allocation8 + $0x1c8] ss:$16 sps:$4 sm:$0xff]   ;;  %v2430_v51 = vld [vmem:[#allocation8 + $0x1c4] ss:$16 sps:$4 sm:$0xff]  }
 0x21c   :  { %1138 = vmatprep.subr.bf16.mxu1 %v2216_v53  ;;  %v2428_v53 = vld [vmem:[#allocation8 + $0x1c0] ss:$16 sps:$4 sm:$0xff]  }
 0x21d   :  { %1152 = vmatpush1.bf16.msra.mxu0 %v2161_v56  ;;  %v2217_v56 = vcombine.low %v763_v52, %v765_v54  ;;  %1139 = vmatpush1.bf16.msra.mxu1 %v2215_v55  ;;  %v2435_v55 = vld [vmem:[#allocation8 + $0x1e4] ss:$16 sps:$4 sm:$0xff]  }
 0x21e   :  { %1153 = vmatprep.subr.bf16.mxu0 %v2166_v57  ;;  %v2218_v57 = vcombine.high %v763_v52, %v765_v54  ;;  %1535 = vmatprep.subr.bf16.mxu1 %v2375_v58  ;;  %v2431_v52 = vld [vmem:[#allocation8 + $0xc8] ss:$16 sps:$4 sm:$0xff]   ;;  %v2437_v58 = vld [vmem:[#allocation8 + $0x10c] ss:$16 sps:$4 sm:$0xff]  }
 0x21f   :  { %v2432_v54 = vld [vmem:[#allocation8 + $0x1e8] ss:$16 sps:$4 sm:$0xff]  }
 0x221   :  { %1154 = vmatpush1.bf16.msra.mxu0 %v2165_v60  ;;  %v485_v60 = vld [vmem:[%s2815_s4 + $0x4] sm:$0x3] }
 0x222   :  { %1155 = vmatprep.subr.bf16.mxu0 %v2170_v61  ;;  %v490_v61 = vrot.slane %v485_v60, %v2686_v13  ;;  %v494_v62 = vrot.slane %v485_v60, %v2692_v15  ;;  %v782_v60 = vsub.s32 3, %v2683_v12 }
 0x225   :  { %1156 = vmatpush1.bf16.msra.mxu0 %v2169_v0 }
 0x226   :  { %1157 = vmatprep.subr.bf16.mxu0 %v2174_v1 }
 0x229   :  { %1158 = vmatpush1.bf16.msra.mxu0 %v2173_v38 }
 0x22a   :  { %1159 = vmatprep.subr.bf16.mxu0 %v2178_v41 }
 0x22d   :  { %1160 = vmatpush1.bf16.msra.mxu0 %v2177_v5  ;;  %v2373_v5 = vld [vmem:[#allocation8] ss:$16 sps:$4 sm:$0xff]  }
 0x22e   :  { %1161 = vmatprep.subr.bf16.mxu0 %v2182_v6  ;;  %v2401_v6 = vld [vmem:[#allocation8 + $0x8] ss:$16 sps:$4 sm:$0xff]  }
 0x231   :  { %1162 = vmatpush1.bf16.msra.mxu0 %v2181_v9  ;;  %v2402_v9 = vld [vmem:[#allocation8 + $0x128] ss:$16 sps:$4 sm:$0xff]  }
 0x232   :  { %1163 = vmatprep.subr.bf16.mxu0 %v2186_v10  ;;  %v2376_v10 = vld [vmem:[#allocation8 + $0x20] ss:$16 sps:$4 sm:$0xff]  }
 0x235   :  { %1164 = vmatpush1.bf16.msra.mxu0 %v2185_v16  ;;  %v2407_v16 = vld [vmem:[#allocation8 + $0x148] ss:$16 sps:$4 sm:$0xff]  }
 0x236   :  { %1165 = vmatprep.subr.bf16.mxu0 %v2190_v17  ;;  %v2379_v17 = vld [vmem:[#allocation8 + $0x40] ss:$16 sps:$4 sm:$0xff]  }
 0x239   :  { %1166 = vmatpush1.bf16.msra.mxu0 %v2189_v20  ;;  %v2412_v20 = vld [vmem:[#allocation8 + $0x168] ss:$16 sps:$4 sm:$0xff]  }
 0x23a   :  { %1167 = vmatprep.subr.bf16.mxu0 %v2194_v21  ;;  %v2382_v21 = vld [vmem:[#allocation8 + $0x60] ss:$16 sps:$4 sm:$0xff]  }
 0x23d   :  { %1168 = vmatpush1.bf16.msra.mxu0 %v2193_v24  ;;  %v2417_v24 = vld [vmem:[#allocation8 + $0x188] ss:$16 sps:$4 sm:$0xff]  }
 0x23e   :  { %1169 = vmatprep.subr.bf16.mxu0 %v2198_v25  ;;  %v2385_v25 = vld [vmem:[#allocation8 + $0x80] ss:$16 sps:$4 sm:$0xff]  }
 0x241   :  { %1170 = vmatpush1.bf16.msra.mxu0 %v2197_v28  ;;  %v2422_v28 = vld [vmem:[#allocation8 + $0x1a8] ss:$16 sps:$4 sm:$0xff]  }
 0x242   :  { %1171 = vmatprep.subr.bf16.mxu0 %v2202_v29  ;;  %v2388_v29 = vld [vmem:[#allocation8 + $0xa0] ss:$16 sps:$4 sm:$0xff]  }
 0x245   :  { %1172 = vmatpush1.bf16.msra.mxu0 %v2201_v32  ;;  %v2391_v32 = vld [vmem:[#allocation8 + $0xc0] ss:$16 sps:$4 sm:$0xff]  }
 0x246   :  { %1173 = vmatprep.subr.bf16.mxu0 %v2206_v33  ;;  %v2396_v33 = vld [vmem:[#allocation8 + $0xe4] ss:$16 sps:$4 sm:$0xff]  }
 0x249   :  { %1174 = vmatpush1.bf16.msra.mxu0 %v2205_v36  ;;  %v2398_v36 = vld [vmem:[#allocation8 + $0x100] ss:$16 sps:$4 sm:$0xff]  }
 0x24a   :  { %1175 = vmatprep.subr.bf16.mxu0 %v2210_v37  ;;  %v2405_v37 = vld [vmem:[#allocation8 + $0x124] ss:$16 sps:$4 sm:$0xff]  }
 0x24d   :  { %1176 = vmatpush1.bf16.msra.mxu0 %v2209_v39  ;;  %v2403_v39 = vld [vmem:[#allocation8 + $0x120] ss:$16 sps:$4 sm:$0xff]  }
 0x24e   :  { %1177 = vmatprep.subr.bf16.mxu0 %v2214_v49  ;;  %v2423_v49 = vld [vmem:[#allocation8 + $0x1a0] ss:$16 sps:$4 sm:$0xff]  }
 0x251   :  { %1178 = vmatpush1.bf16.msra.mxu0 %v2213_v48  ;;  %v2425_v48 = vld [vmem:[#allocation8 + $0x1a4] ss:$16 sps:$4 sm:$0xff]  }
 0x252   :  { %1179 = vmatprep.subr.bf16.mxu0 %v2218_v57  ;;  %v2433_v57 = vld [vmem:[#allocation8 + $0x1e0] ss:$16 sps:$4 sm:$0xff]  }
 0x255   :  { %1180 = vmatpush1.bf16.msra.mxu0 %v2217_v56  ;;  %v2436_v56 = vld [vmem:[#allocation8 + $0xe8] ss:$16 sps:$4 sm:$0xff]  }
 0x256   :  { %2292 = vmatprep.subr.bf16.mxu0 %v2397_v59  ;;  %v766_v59 = vld [vmem:[%s2815_s4 + $0x6] sm:$0xf] }
 0x2eb   :  { %v691_v63 = vpop.f32.mrb[4].mxu0 }
 0x2ec   :  { %v692_v0 = vadd.f32 %v691_v63, %v490_v61  ;;  %v693_v1 = vpop.f32.mrb[5].mxu0  ;;  %v771_v61 = vrot.slane %v766_v59, %v2686_v13  ;;  %v783_v63 = vrot.slane %v766_v59, %v782_v60 }
 0x2ed   :  { %v694_v2 = vadd.f32 %v693_v1, %v494_v62  ;;  %v695_v3 = vpop.f32.mrb[6].mxu0  ;;  %v775_v62 = vrot.slane %v766_v59, %v2692_v15 }
 0x2ee   :  { %v698_v38 = vmax.f32 %v692_v0, 0.0  ;;  %v696_v41 = vpop.f32.mrb[7].mxu0 }
 0x2ef   :  { %v699_v44 = vmax.f32 %v694_v2, 0.0 }
 0x2f0   :  { %v700_v7 = vpack.c.bf16 %v698_v38, %v698_v38 }
 0x2f1   :  { %v701_v4 = vpack.c.bf16 %v699_v44, %v699_v44 }
 0x2f3   :  { %1140 = vmatprep.mubr.bf16.mxu1 %v701_v4  ;;  %1181 = vmatprep.mubr.bf16.mxu0 %v701_v4 }
 0x2f4   :  { %1141 = vmatmul.mubr.bf16.vlgmr.msra.gmra.mrb[4].mxu1 %v700_v7  ;;  %1182 = vmatmul.mubr.bf16.vlgmr.msra.gmra.mrb[8].mxu0 %v700_v7 }
 0x2f5   :  { %1536 = vmatpush1.bf16.msra.mxu1 %v2373_v5  ;;  %2293 = vmatpush3.bf16.msra.mxu0 %v2401_v6 }
 0x2f6   :  { %1537 = vmatprep.subr.bf16.mxu1 %v2378_v8  ;;  %2294 = vmatprep.subr.bf16.mxu0 %v2402_v9 }
 0x2f9   :  { %1538 = vmatpush1.bf16.msra.mxu1 %v2376_v10  ;;  %2295 = vmatpush3.bf16.msra.mxu0 %v2406_v11 }
 0x2fa   :  { %1539 = vmatprep.subr.bf16.mxu1 %v2381_v14  ;;  %2296 = vmatprep.subr.bf16.mxu0 %v2407_v16  ;;  %v2438_v14 = vld [vmem:[#allocation8 + $0xc] ss:$16 sps:$4 sm:$0xff]  }
 0x2fd   :  { %1540 = vmatpush1.bf16.msra.mxu1 %v2379_v17  ;;  %2297 = vmatpush3.bf16.msra.mxu0 %v2411_v18  ;;  %v2439_v17 = vld [vmem:[#allocation8 + $0x12c] ss:$16 sps:$4 sm:$0xff]  }
 0x2fe   :  { %1541 = vmatprep.subr.bf16.mxu1 %v2384_v19  ;;  %2298 = vmatprep.subr.bf16.mxu0 %v2412_v20  ;;  %v2440_v19 = vld [vmem:[#allocation8 + $0x2c] ss:$16 sps:$4 sm:$0xff]  }
 0x2ff   :  { %v2441_v20 = vld [vmem:[#allocation8 + $0x14c] ss:$16 sps:$4 sm:$0xff]  }
 0x301   :  { %1542 = vmatpush1.bf16.msra.mxu1 %v2382_v21  ;;  %2299 = vmatpush3.bf16.msra.mxu0 %v2416_v22  ;;  %v2442_v21 = vld [vmem:[#allocation8 + $0x4c] ss:$16 sps:$4 sm:$0xff]  }
 0x302   :  { %1543 = vmatprep.subr.bf16.mxu1 %v2387_v23  ;;  %2300 = vmatprep.subr.bf16.mxu0 %v2417_v24  ;;  %v2443_v22 = vld [vmem:[#allocation8 + $0x16c] ss:$16 sps:$4 sm:$0xff]  }
 0x303   :  { %v2444_v23 = vld [vmem:[#allocation8 + $0x6c] ss:$16 sps:$4 sm:$0xff]  }
 0x304   :  { %v2445_v24 = vld [vmem:[#allocation8 + $0x18c] ss:$16 sps:$4 sm:$0xff]  }
 0x305   :  { %1544 = vmatpush1.bf16.msra.mxu1 %v2385_v25  ;;  %2301 = vmatpush3.bf16.msra.mxu0 %v2421_v26  ;;  %v2446_v25 = vld [vmem:[#allocation8 + $0x8c] ss:$16 sps:$4 sm:$0xff]   ;;  %v778_v26 = vsub.s32 2, %v2683_v12 }
 0x306   :  { %1545 = vmatprep.subr.bf16.mxu1 %v2390_v27  ;;  %2302 = vmatprep.subr.bf16.mxu0 %v2422_v28  ;;  %v2447_v27 = vld [vmem:[#allocation8 + $0x1ac] ss:$16 sps:$4 sm:$0xff]  }
 0x307   :  { %v2448_v28 = vld [vmem:[#allocation8 + $0xac] ss:$16 sps:$4 sm:$0xff]  }
 0x308   :  { %v1262_v12 = vld [vmem:[%s2815_s4 + $0xa] sm:$0x7] }
 0x309   :  { %1546 = vmatpush1.bf16.msra.mxu1 %v2388_v29  ;;  %2303 = vmatpush3.bf16.msra.mxu0 %v2426_v30  ;;  %v779_v29 = vrot.slane %v766_v59, %v778_v26  ;;  %v2449_v30 = vld [vmem:[#allocation8 + $0x1cc] ss:$16 sps:$4 sm:$0xff]  }
 0x30a   :  { %1547 = vmatprep.subr.bf16.mxu1 %v2393_v31  ;;  %2304 = vmatprep.subr.bf16.mxu0 %v2427_v50  ;;  %v2450_v31 = vld [vmem:[#allocation8 + $0xcc] ss:$16 sps:$4 sm:$0xff]  }
 0x30d   :  { %1548 = vmatpush1.bf16.msra.mxu1 %v2391_v32  ;;  %2305 = vmatpush3.bf16.msra.mxu0 %v2431_v52 }
 0x30e   :  { %1549 = vmatprep.subr.bf16.mxu1 %v2396_v33  ;;  %2306 = vmatprep.subr.bf16.mxu0 %v2432_v54  ;;  %v2451_v33 = vld [vmem:[#allocation8 + $0x1ec] ss:$16 sps:$4 sm:$0xff]  }
 0x311   :  { %1550 = vmatpush1.bf16.msra.mxu1 %v2394_v34  ;;  %2307 = vmatpush3.bf16.msra.mxu0 %v2436_v56  ;;  %v2452_v34 = vld [vmem:[#allocation8 + $0xec] ss:$16 sps:$4 sm:$0xff]  }
 0x312   :  { %1551 = vmatprep.subr.bf16.mxu1 %v2400_v35  ;;  %2314 = vmatprep.subr.bf16.mxu0 %v2437_v58 }
 0x315   :  { %1552 = vmatpush1.bf16.msra.mxu1 %v2398_v36 }
 0x316   :  { %1553 = vmatprep.subr.bf16.mxu1 %v2405_v37  ;;  %v1267_v37 = vrot.slane %v1262_v12, %v2686_v13 }
 0x319   :  { %1554 = vmatpush1.bf16.msra.mxu1 %v2403_v39  ;;  %v1271_v39 = vrot.slane %v1262_v12, %v2692_v15 }
 0x31a   :  { %1555 = vmatprep.subr.bf16.mxu1 %v2410_v40 }
 0x31d   :  { %1556 = vmatpush1.bf16.msra.mxu1 %v2408_v42 }
 0x31e   :  { %1557 = vmatprep.subr.bf16.mxu1 %v2415_v43  ;;  %v1275_v43 = vrot.slane %v1262_v12, %v778_v26 }
 0x321   :  { %1558 = vmatpush1.bf16.msra.mxu1 %v2413_v45 }
 0x322   :  { %1559 = vmatprep.subr.bf16.mxu1 %v2420_v46 }
 0x325   :  { %1560 = vmatpush1.bf16.msra.mxu1 %v2418_v47 }
 0x326   :  { %1561 = vmatprep.subr.bf16.mxu1 %v2425_v48 }
 0x329   :  { %1562 = vmatpush1.bf16.msra.mxu1 %v2423_v49 }
 0x32a   :  { %1563 = vmatprep.subr.bf16.mxu1 %v2430_v51 }
 0x32d   :  { %1564 = vmatpush1.bf16.msra.mxu1 %v2428_v53 }
 0x32e   :  { %1565 = vmatprep.subr.bf16.mxu1 %v2435_v55 }
 0x331   :  { %1566 = vmatpush1.bf16.msra.mxu1 %v2433_v57 }
 0x3c7   :  { %v1142_v0 = vpop.f32.mrb[4].mxu1  ;;  %v1183_v1 = vpop.f32.mrb[8].mxu0 }
 0x3c8   :  { %v1143_v2 = vadd.f32 %v1142_v0, %v771_v61  ;;  %v1144_v3 = vpop.f32.mrb[5].mxu1  ;;  %v1185_v38 = vpop.f32.mrb[9].mxu0  ;;  %v1184_v32 = vadd.f32 %v1183_v1, %v779_v29 }
 0x3c9   :  { %v1145_v41 = vadd.f32 %v1144_v3, %v775_v62  ;;  %v1186_v44 = vadd.f32 %v1185_v38, %v783_v63  ;;  %v1146_v4 = vpop.f32.mrb[6].mxu1  ;;  %v1187_v5 = vpop.f32.mrb[10].mxu0 }
 0x3ca   :  { %v1190_v6 = vmax.f32 %v1143_v2, 0.0  ;;  %v1147_v7 = vpop.f32.mrb[7].mxu1  ;;  %v1188_v8 = vpop.f32.mrb[11].mxu0  ;;  %v1192_v35 = vmax.f32 %v1184_v32, 0.0 }
 0x3cb   :  { %v1191_v9 = vmax.f32 %v1145_v41, 0.0  ;;  %v1193_v10 = vmax.f32 %v1186_v44, 0.0 }
 0x3cc   :  { %v1194_v16 = vpack.c.bf16 %v1190_v6, %v1190_v6  ;;  %v1196_v36 = vpack.c.bf16 %v1192_v35, %v1192_v35 }
 0x3cd   :  { %v1195_v11 = vpack.c.bf16 %v1191_v9, %v1191_v9  ;;  %v1197_v18 = vpack.c.bf16 %v1193_v10, %v1193_v10 }
 0x3cf   :  { %1567 = vmatprep.mubr.bf16.mxu1 %v1195_v11  ;;  %1608 = vmatprep.mubr.bf16.mxu0 %v1195_v11 }
 0x3d0   :  { %1568 = vmatmul.mubr.bf16.vlgmr.msra.gmra.mrb[8].mxu1 %v1194_v16  ;;  %1609 = vmatmul.mubr.bf16.vlgmr.msra.gmra.mrb[12].mxu0 %v1194_v16 }
 0x3d1   :  { %2315 = vmatpush3.bf16.msra.mxu0 %v2438_v14  ;;  %2047 = vmatprep.mubr.bf16.mxu0 %v1197_v18 }
 0x3d2   :  { %2316 = vmatprep.subr.bf16.mxu0 %v2439_v17 }
 0x3d5   :  { %2317 = vmatpush3.bf16.msra.mxu0 %v2440_v19  ;;  %v2589_v19 = vmov 683565275  }
 0x3d6   :  { %2318 = vmatprep.subr.bf16.mxu0 %v2441_v20 }
 0x3d9   :  { %2319 = vmatpush3.bf16.msra.mxu0 %v2442_v21  ;;  %v2590_v21 = vmov 2475754826  }
 0x3da   :  { %2320 = vmatprep.subr.bf16.mxu0 %v2443_v22 }
 0x3dd   :  { %2321 = vmatpush3.bf16.msra.mxu0 %v2444_v23  ;;  %v2275_v23 = vld [vmem:[%s2815_s4 + $0xd] ss:$0 sm:$0xff] }
 0x3de   :  { %2322 = vmatprep.subr.bf16.mxu0 %v2445_v24 }
 0x3e1   :  { %2323 = vmatpush3.bf16.msra.mxu0 %v2446_v25  ;;  %v2591_v25 = vmov 2131351028  }
 0x3e2   :  { %2324 = vmatprep.subr.bf16.mxu0 %v2447_v27 }
 0x3e5   :  { %2325 = vmatpush3.bf16.msra.mxu0 %v2448_v28  ;;  %v2592_v28 = vmov 2102212464  }
 0x3e6   :  { %2326 = vmatprep.subr.bf16.mxu0 %v2449_v30 }
 0x3e9   :  { %2327 = vmatpush3.bf16.msra.mxu0 %v2450_v31  ;;  %v2593_v31 = vmov 920167782  }
 0x3ea   :  { %2328 = vmatprep.subr.bf16.mxu0 %v2451_v33 }
 0x3ed   :  { %2329 = vmatpush3.bf16.msra.mxu0 %v2452_v34  ;;  %v2594_v34 = vmov 1326507024  }
 0x3f0   :  { %2048 = vmatmul.mubr.bf16.vlgmr.msra.gmra.mrb[16].mxu0 %v1196_v36 }
 0x4a3   :  { %v1569_v40 = vpop.f32.mrb[8].mxu1  ;;  %v2308_v42 = vpop.f32.mrb[12].mxu0 }
 0x4a4   :  { %v1570_v45 = vadd.f32 %v1569_v40, %v1267_v37  ;;  %v1571_v46 = vpop.f32.mrb[9].mxu1  ;;  %v2309_v47 = vpop.f32.mrb[13].mxu0 }
 0x4a5   :  { %v1572_v48 = vadd.f32 %v1571_v46, %v1271_v39  ;;  %v2310_v49 = vadd.f32 %v2309_v47, %v2308_v42  ;;  %v1573_v50 = vpop.f32.mrb[10].mxu1  ;;  %v2311_v51 = vpop.f32.mrb[14].mxu0 }
 0x4a6   :  { %v1616_v52 = vmul.f32 %v1570_v45, %v1570_v45  ;;  %v1574_v53 = vpop.f32.mrb[11].mxu1  ;;  %v2312_v54 = vpop.f32.mrb[15].mxu0 }
 0x4a7   :  { %v1618_v55 = vmul.f32 %v1572_v48, %v1572_v48  ;;  %v1611_v56 = vadd.f32 %v2310_v49, %v1275_v43 }
 0x4a8   :  { %v1617_v57 = vadd.f32 1e-05, %v1616_v52 }
 0x4a9   :  { %v1620_v58 = vmul.f32 %v1611_v56, %v1611_v56 }
 0x4aa   :  { %v1619_v13 = vadd.f32 %v1618_v55, %v1617_v57 }
 0x4ac   :  { %v1621_v59 = vadd.f32 %v1620_v58, %v1619_v13 }
 0x4ae   :  { %2453 = vrsqrt.f32 %v1621_v59 }
 0x4b8   :  { %v2454_v15 = vpop.eup %2453 }
 0x4b9   :  { %v2729_v60 = vmul.f32 %v2454_v15, %v1621_v59  ;;  %v2731_v61 = vmul.f32 %v2454_v15, %v1570_v45  ;;  %v2733_v62 = vmul.f32 %v2454_v15, %v1572_v48  ;;  %v2735_v63 = vmul.f32 %v2454_v15, %v1611_v56 }
 0x4bb   :  { %v1630_v0 = vand.u32 2139095040, %v2729_v60  ;;  %v2740_v1 = vmul.f32 %v2733_v62, %v2731_v61  ;;  %v2744_v2 = vmul.f32 %v2735_v63, %v2731_v61  ;;  %v2748_v38 = vmul.f32 %v2735_v63, %v2733_v62 }
 0x4bc   :  { %v1627_v44 = vand.u32 2147483647, %v2729_v60  ;;  %vm1629_vm11 = vcmp.lt.s32.totalorder %v2729_v60, 0 }
 0x4bd   :  { %v1631_v3 = vshrl.u32 %v1630_v0, 23 }
 0x4be   :  { %v1634_v6 = vand.u32 8388607, %v1627_v44  ;;  %vm1628_vm12 = vcmp.le.f32.partialorder %v1627_v44, 0.7853982 }
 0x4bf   :  { %v2267_v41 = vadd.s32 4294967169, %v1631_v3 }
 0x4c0   :  { %v1635_v17 = vor.u32 8388608, %v1634_v6 }
 0x4c1   :  { %v1637_v4 = vadd.s32 1, %v2267_v41 }
 0x4c2   :  { %v1675_v52 = vshll.u32 %v1635_v17, 8 }
 0x4c3   :  { %vm1638_vm3 = vcmp.gt.s32.totalorder %v1637_v4, 0  ;;  %v2330_v5 = vpop.f32.mrb[16].mxu0 }
 0x4c4   :  { %v1639_v7 = vsel %vm1638_vm3, %v1637_v4, 0  ;;  %v2331_v8 = vpop.f32.mrb[17].mxu0  ;;  %vm1719_vm3 = vweird.f32 %v2729_v60 }
 0x4c5   :  { %v1641_v9 = vand.u32 31, %v1639_v7  ;;  %v2332_v10 = vadd.f32 %v2331_v8, %v2330_v5  ;;  %v2333_v11 = vpop.f32.mrb[18].mxu0  ;;  %v1640_v18 = vshrl.u32 %v1639_v7, 5 }
 0x4c6   :  { %v2334_v14 = vpop.f32.mrb[19].mxu0 }
 0x4c7   :  { %v1642_v16 = vsub.s32 32, %v1641_v9  ;;  %v1644_v20 = vshll.u32 %v2589_v19, %v1641_v9  ;;  %v1647_v22 = vshll.u32 %v2590_v21, %v1641_v9  ;;  %v1650_v27 = vshll.u32 %v2591_v25, %v1641_v9 }
 0x4c8   :  { %v1653_v30 = vshll.u32 %v2592_v28, %v1641_v9  ;;  %v1656_v33 = vshll.u32 %v2593_v31, %v1641_v9  ;;  %v2050_v39 = vadd.f32 %v2332_v10, %v2275_v23  ;;  %vm1659_vm5 = vcmp.lt.s32.totalorder %v1640_v18, 1 }
 0x4c9   :  { %v1645_v24 = vshrl.u32 %v2590_v21, %v1642_v16  ;;  %v1648_v26 = vshrl.u32 %v2591_v25, %v1642_v16  ;;  %v1651_v29 = vshrl.u32 %v2592_v28, %v1642_v16  ;;  %v1654_v32 = vshrl.u32 %v2593_v31, %v1642_v16 }
 0x4ca   :  { %v1657_v35 = vshrl.u32 %v2594_v34, %v1642_v16  ;;  %vm1662_vm6 = vcmp.lt.s32.totalorder %v1640_v18, 4  ;;  %2056 = vst.msk [vmem:[%s2817_s6] sm:$0xff] %vm2055_vm4, %v2050_v39  ;;  %v1643_v47 = vshrl.u32 %v2589_v19, %v1642_v16  ;;  %vm1661_vm7 = vcmp.lt.s32.totalorder %v1640_v18, 3  ;;  %s2595_s6 = smov [#allocation10]  }
 0x4cb   :  { %v1646_v36 = vor.u32 %v1645_v24, %v1644_v20  ;;  %v1649_v12 = vor.u32 %v1648_v26, %v1647_v22  ;;  %v1652_v37 = vor.u32 %v1651_v29, %v1650_v27  ;;  %v1655_v40 = vor.u32 %v1654_v32, %v1653_v30  ;;  %s2062_s15 = sshll.u32 %s2595_s6, 4  ;;  %s2063_s15 = int_to_ptr.vmem [resolvable:$true] %s2062_s15 }
 0x4cc   :  { %v1658_v42 = vor.u32 %v1657_v35, %v1656_v33  ;;  %vm1660_vm8 = vcmp.lt.s32.totalorder %v1640_v18, 2  ;;  %vm1839_vm4 = vcmask 179200   ;;  %s2547_s16 = scalar_lea.vmem %s2063_s15, 1152  ;;  %p2552_p5 = scmp.lt.s32.totalorder %s2063_s15, %s2063_s15 }
 0x4cd   :  { %v1664_v43 = vsel %vm1662_vm6, %v1652_v37, 2102212464  ;;  %v1667_v45 = vsel %vm1659_vm5, %v1646_v36, %v1649_v12  ;;  %v1671_v46 = vsel %vm1659_vm5, %v1649_v12, %v1652_v37  ;;  %v1668_v48 = vsel %vm1662_vm6, %v1655_v40, 920167782  ;;  %p2548_p4 = scmp.ne.s32.totalorder %s2063_s15, %s2547_s16  ;;  %p2553_p6 = scmp.lt.s32.totalorder %s2547_s16, %s2547_s16 }
 0x4ce   :  { %v1672_v49 = vsel %vm1662_vm6, %v1658_v42, 1326507024  ;;  %v1669_v50 = vsel %vm1661_vm7, %v1652_v37, %v1668_v48  ;;  %v1663_v53 = vsel %vm1659_vm5, %v1643_v47, %v1646_v36  ;;  %v1665_v54 = vsel %vm1661_vm7, %v1649_v12, %v1664_v43 }
 0x4cf   :  { %v1673_v51 = vsel %vm1661_vm7, %v1655_v40, %v1672_v49  ;;  %v1670_v55 = vsel %vm1660_vm8, %v1667_v45, %v1669_v50  ;;  %v1666_v15 = vsel %vm1660_vm8, %v1663_v53, %v1665_v54  ;;  %v1835_v42 = vmul.f32 %v2731_v61, %v2731_v61  ;;  %p2554_p7 = por %p2553_p6, %p2552_p5 }
 0x4d0   :  { %v1674_v56 = vsel %vm1660_vm8, %v1671_v46, %v1673_v51  ;;  %v2763_v13 = vmul.u32.u64.low %v1675_v52, %v1670_v55  ;;  %v2764_v59 = vmul.u32.u64.high %v1675_v52, %v1670_v55, %v2763_v13  ;;  %v1682_v3 = vmul.u32 %v1675_v52, %v1666_v15 }
 0x4d1   :  { %v2760_v57 = vmul.u32.u64.low %v1675_v52, %v1674_v56  ;;  %v2761_v58 = vmul.u32.u64.high %v1675_v52, %v1674_v56, %v2760_v57  ;;  %v1856_v43 = vmul.f32 %v2733_v62, %v2733_v62  ;;  %v1874_v45 = vmul.f32 %v2735_v63, %v2735_v63  ;;  %p2555_p8 = pnand %p2554_p7, %p2548_p4 }
 0x4d2   :  { %v1685_v0 = vadd.s32 1, %v2764_v59  ;;  %v1836_v52 = vsub.f32 1.0, %v1835_v42 }
 0x4d3   :  { %vm1684_vm9 = vc.u32 %v2761_v58, %v2763_v13  ;;  %v1683_v17 = vadd.s32 %v2763_v13, %v2761_v58  ;;  %v1857_v55 = vsub.f32 1.0, %v1856_v43  ;;  %v1875_v56 = vsub.f32 1.0, %v1874_v45 }
 0x4d4   :  { %v1686_v41 = vsel %vm1684_vm9, %v1685_v0, %v2764_v59 }
 0x4d5   :  { %v1687_v4 = vadd.s32 %v1686_v41, %v1682_v3 }
 0x4d7   :  { %v1688_v5 = vadd.s32 536870912, %v1687_v4 }
 0x4d9   :  { %v1689_v6 = vshrl.u32 %v1688_v5, 30 }
 0x4db   :  { %v1690_v7 = vshll.u32 %v1689_v6, 30  ;;  %v1713_v29 = vsub.s32 4, %v1689_v6 }
 0x4dd   :  { %v1691_v8 = vsub.s32 %v1687_v4, %v1690_v7  ;;  %v1714_v32 = vsel %vm1629_vm11, %v1713_v29, %v1689_v6 }
 0x4de   :  { %v1716_v34 = vsel %vm1628_vm12, 0, %v1714_v32 }
 0x4df   :  { %v1693_v9 = vsub.s32 0, %v1691_v8  ;;  %v1823_v35 = vadd.s32 3, %v1716_v34  ;;  %v1720_v36 = vand.u32 3, %v1716_v34 }
 0x4e1   :  { %v2268_v10 = vmin.u32 %v1693_v9, %v1691_v8  ;;  %v1824_v12 = vand.u32 3, %v1823_v35  ;;  %vm1725_vm13 = vcmp.eq.s32.totalorder %v1720_v36, 2  ;;  %vm1722_vm15 = vcmp.eq.s32.totalorder %v1720_v36, 0 }
 0x4e2   :  { %vm1721_vm1 = vcmp.lt.s32.totalorder %v1720_v36, 2 }
 0x4e3   :  { %v1695_v11 = vclz %v2268_v10  ;;  %vm1829_vm14 = vcmp.eq.s32.totalorder %v1824_v12, 2  ;;  %vm1826_vm0 = vcmp.eq.s32.totalorder %v1824_v12, 0  ;;  %vm1825_vm2 = vcmp.lt.s32.totalorder %v1824_v12, 2 }
 0x4e5   :  { %v2269_v14 = vadd.s32 4294967294, %v1695_v11 }
 0x4e7   :  { %vm2270_vm10 = vcmp.lt.s32.totalorder %v2269_v14, 0 }
 0x4e8   :  { %v1698_v16 = vsel %vm2270_vm10, 0, %v2269_v14 }
 0x4e9   :  { %v1699_v18 = vsub.s32 32, %v1698_v16  ;;  %v1703_v19 = vsub.s32 4294967266, %v1698_v16  ;;  %v1700_v20 = vshll.u32 %v1691_v8, %v1698_v16 }
 0x4eb   :  { %v1701_v21 = vshrl.u32 %v1683_v17, %v1699_v18  ;;  %v1704_v22 = vadd.s32 127, %v1703_v19 }
 0x4ed   :  { %v1702_v23 = vor.u32 %v1701_v21, %v1700_v20  ;;  %v1705_v24 = vshll.u32 %v1704_v22, 23 }
 0x4ef   :  { %v1706_v25 = vor.u32 4788187, %v1705_v24  ;;  %v1709_v27 = vcvt.s32.f32 %v1702_v23 }
 0x4f1   :  { %v1707_v26 = vand.u32 2147483647, %v1706_v25 }
 0x4f3   :  { %v1710_v28 = vmul.f32 %v1709_v27, %v1707_v26 }
 0x4f5   :  { %v1711_v30 = vxor.u32 2147483648, %v1710_v28 }
 0x4f7   :  { %v1712_v31 = vsel %vm1629_vm11, %v1711_v30, %v1710_v28 }
 0x4f8   :  { %v1715_v33 = vsel %vm1628_vm12, %v2729_v60, %v1712_v31 }
 0x4f9   :  { %2455 = vcosq.f32 %v1715_v33 }
 0x4fa   :  { %2457 = vsinq.f32 %v1715_v33 }
 0x503   :  { %v2456_v37 = vpop.eup %2455 }
 0x504   :  { %v2458_v39 = vpop.eup %2457  ;;  %v1726_v40 = vxor.u32 2147483648, %v2456_v37 }
 0x505   :  { %v1723_v44 = vxor.u32 2147483648, %v2458_v39 }
 0x506   :  { %v1727_v46 = vsel %vm1725_vm13, %v1726_v40, %v2458_v39  ;;  %v1831_v47 = vsel %vm1829_vm14, %v1726_v40, %v2458_v39 }
 0x507   :  { %v1724_v48 = vsel %vm1722_vm15, %v2456_v37, %v1723_v44  ;;  %v1828_v49 = vsel %vm1826_vm0, %v2456_v37, %v1723_v44 }
 0x508   :  { %v1728_v50 = vsel %vm1721_vm1, %v1724_v48, %v1727_v46  ;;  %v1832_v51 = vsel %vm1825_vm2, %v1828_v49, %v1831_v47 }
 0x509   :  { %v1729_v53 = vsel %vm1719_vm3, nan, %v1728_v50  ;;  %v1833_v54 = vsel %vm1719_vm3, nan, %v1832_v51 }
 0x50a   :  { %v1834_v57 = vsub.f32 1.0, %v1729_v53  ;;  %v1837_v58 = vmul.f32 %v1836_v52, %v1729_v53  ;;  %v1843_v13 = vmul.f32 %v1833_v54, %v2735_v63  ;;  %v1849_v59 = vmul.f32 %v1833_v54, %v2733_v62 }
 0x50b   :  { %v1858_v15 = vmul.f32 %v1857_v55, %v1729_v53  ;;  %v1864_v0 = vmul.f32 %v1833_v54, %v2731_v61  ;;  %v1876_v3 = vmul.f32 %v1875_v56, %v1729_v53 }
 0x50c   :  { %v1838_v41 = vadd.f32 %v1837_v58, %v1835_v42  ;;  %v1842_v60 = vmul.f32 %v2740_v1, %v1834_v57  ;;  %v1848_v4 = vmul.f32 %v2744_v2, %v1834_v57  ;;  %v1863_v5 = vmul.f32 %v2748_v38, %v1834_v57 }
 0x50d   :  { %v1859_v6 = vadd.f32 %v1858_v15, %v1856_v43  ;;  %v1877_v7 = vadd.f32 %v1876_v3, %v1874_v45 }
 0x50e   :  { %1840 = vst.msk [vmem:[#allocation10] sm:$0xff] %vm1839_vm4, %v1838_v41  ;;  %v1844_v63 = vsub.f32 %v1842_v60, %v1843_v13  ;;  %v1850_v62 = vadd.f32 %v1849_v59, %v1848_v4  ;;  %v1853_v8 = vadd.f32 %v1843_v13, %v1842_v60  ;;  %v1865_v9 = vsub.f32 %v1863_v5, %v1864_v0 }
 0x50f   :  { %1861 = vst.msk [vmem:[#allocation10 + $0x20] sm:$0xff] %vm1839_vm4, %v1859_v6  ;;  %v1868_v61 = vsub.f32 %v1848_v4, %v1849_v59  ;;  %v1871_v10 = vadd.f32 %v1864_v0, %v1863_v5  ;;  %1879 = vst.msk [vmem:[#allocation10 + $0x40] sm:$0xff] %vm1839_vm4, %v1877_v7 }
 0x510   :  { %1846 = vst.msk [vmem:[#allocation10 + $0x8] sm:$0xff] %vm1839_vm4, %v1844_v63  ;;  %1852 = vst.msk [vmem:[#allocation10 + $0x10] sm:$0xff] %vm1839_vm4, %v1850_v62 }
 0x511   :  { %1855 = vst.msk [vmem:[#allocation10 + $0x18] sm:$0xff] %vm1839_vm4, %v1853_v8  ;;  %1867 = vst.msk [vmem:[#allocation10 + $0x28] sm:$0xff] %vm1839_vm4, %v1865_v9 }
 0x512   :  { %1870 = vst.msk [vmem:[#allocation10 + $0x30] sm:$0xff] %vm1839_vm4, %v1868_v61  ;;  %1873 = vst.msk [vmem:[#allocation10 + $0x38] sm:$0xff] %vm1839_vm4, %v1871_v10 }
 0x513   :  { %2558 = shalt.err (!%p2555_p8)
}
 0x514   :  { %s2559_s19 = scalar_lea.hbm %s2816_s5, 1152 }
 0x515   :  { %p2560_p9 = scmp.ne.s32.totalorder %s2816_s5, %s2559_s19  ;;  %p2563_p10 = scmp.lt.u32.totalorder %s2559_s19, %s2816_s5 }
 0x517   :  { %p2565_p11 = pnand %p2563_p10, %p2560_p9 }
 0x519   :  { %2568 = shalt.err (!%p2565_p11)
}
 0x51a   :  { %2068 = dma.vmem_to_hbm [thread:$0]  %s2063_s15, 1152, %s2816_s5, [#allocation4], %s2578_s7, %s2578_s7, %s2579_s8  }
 0x51b   :  { %2575 = dma.done.wait [#allocation4], 1152  }
 0x51c   :  { %2576 = vsyncadd [#allocation4], 4294966144 }
 0x51d   :  { %2076 = vsyncpa [#allocation3], 1 }
 0x51e   :  { %2077 = vsyncpa [#allocation6], 1 }
 0x51f   :  { %2078 = vsyncpa [#allocation9], 1 }
 0x520   :  { %2079 = vsyncpa [#allocation4], 1 }

</bundles_post_ra>
